<compile_context>
chip_gen: v6e
topology: v6e:2x2x1
jax: 0.10.0
libtpu: 0.0.40
codegen_flags: <defaults>
</compile_context>

<pallas_src>
import math
import numpy as np
import jax
import jax.numpy as jnp
from jax.experimental import pallas as pl
from jax.experimental.pallas import tpu as pltpu

# ----------------------------------------------------------------------------
# Small synthetic HTS instance, consistent with Model.__init__
# ----------------------------------------------------------------------------
PARENTS_NUMBER_LIST = [2, 2, 3]   # root has 2 children, they have 2 and 3 children
TIME_STEP = 8
HORIZON = 1                        # forward-path shapes require horizon == 1
UNITS = (32, 32, 32)               # (d_model, d_model_qk, d_model_v)
HEADS = 4
NBLOCK = 2
NSTACK = 3                         # full BU + TD rearrangement path
NOI_STD = 0.05
NOI_LEVEL = 2

U0, U1, U2 = UNITS
DK = U1 // HEADS
DV = U2 // HEADS


def get_pred_loc(level_number_list):
    # identical to get_HTS_strc.get_pred_loc
    now_loc = 0
    pred_loc = [1]
    level_quan = 1
    while True:
        next_loc = now_loc + level_quan
        if next_loc == len(level_number_list):
            pred_loc.append(sum(level_number_list[now_loc:]))
            break
        level_quan = sum(level_number_list[now_loc:next_loc])
        now_loc = next_loc
        pred_loc.append(level_quan)
    return pred_loc


HIER = get_pred_loc(PARENTS_NUMBER_LIST)   # nodes per level, e.g. [1, 2, 5]
LEVELS = len(HIER)
N_TS = sum(HIER)
OUT_LANES = 128                            # lane-dense packed output slab width
OUT_USED = 1 + LEVELS + (LEVELS - 1)       # y | p_attn_sum | x_DPD_overall columns


# ----------------------------------------------------------------------------
# Static-slab row layout (all row offsets are multiples of 8, lane offset 0)
# ----------------------------------------------------------------------------
def _r8(n):
    return ((n + 7) // 8) * 8


ROW_WVEC = 0                                        # fc2dpd row, fc2 row
ROW_GEXT = ROW_WVEC + _r8(2)                        # [g_flat ; I_N]        (L+1)*N x N
ROW_M = ROW_GEXT + _r8((LEVELS + 1) * N_TS)         # reconciliation M      N x N
ROW_SEG = ROW_M + _r8(N_TS)                         # block-diag seg sums   (L-1)N x (L-1)N
ROW_POOL = ROW_SEG + _r8((LEVELS - 1) * N_TS)       # head_pool             U1 x H
ROW_EXP = ROW_POOL + _r8(U1)                        # head_exp              H x U2
ROW_WBASE = ROW_EXP + _r8(HEADS)                    # per-block weights start

OFF_WL = 0                                          # fcLSTM   T x U0
OFF_WL1 = OFF_WL + _r8(TIME_STEP)                   # fcLSTM1  U0 x U0
OFF_WQKV = OFF_WL1 + _r8(U0)                        # fused Wq|Wk|Wv  U0 x 3U
OFF_BQKV = OFF_WQKV + _r8(U0)                       # fused bias      1 x 3U
OFF_WO = OFF_BQKV + _r8(1)                          # Wo      U2 x U2
OFF_BO = OFF_WO + _r8(U2)                           # bo      1 x U2
OFF_WF20 = OFF_BO + _r8(1)                          # fc20    U2 x T
ROW_WSTRIDE = OFF_WF20 + _r8(U2)
STAT_ROWS = ROW_WBASE + NBLOCK * ROW_WSTRIDE        # 408 for this instance


# ----------------------------------------------------------------------------
# Pallas kernel
# ----------------------------------------------------------------------------
def _softplus(v):
    # nn.Softplus (numerically stable)
    return jnp.maximum(v, 0.0) + jnp.log1p(jnp.exp(-jnp.abs(v)))


def sahts_kernel(dyn_ref, stat_ref, out_ref):
    f32 = jnp.float32
    T = TIME_STEP

    x = dyn_ref[0:N_TS, :]                               # [N, T] (noised input)
    dp = dyn_ref[N_TS:, :]                               # [(L-1)*N, T] (DPfrom)

    wdpd_row = stat_ref[ROW_WVEC:ROW_WVEC + 1, 0:T]      # fc2dpd weight (row form)
    wf2_row = stat_ref[ROW_WVEC + 1:ROW_WVEC + 2, 0:T]   # fc2 weight    (row form)
    g_ext = stat_ref[ROW_GEXT:ROW_GEXT + (LEVELS + 1) * N_TS, 0:N_TS]
    m_mat = stat_ref[ROW_M:ROW_M + N_TS, 0:N_TS]
    seg = stat_ref[ROW_SEG:ROW_SEG + (LEVELS - 1) * N_TS, 0:(LEVELS - 1) * N_TS]
    head_pool = stat_ref[ROW_POOL:ROW_POOL + U1, 0:HEADS]    # per-head sum, 1/sqrt(dk) folded
    head_exp = stat_ref[ROW_EXP:ROW_EXP + HEADS, 0:U2]       # head -> DV-lane expansion

    # ---- x_DPD_overall: softplus(fc2dpd(DPfrom)) + per-(parent,level) softmax ----
    below = (jnp.sum(seg, axis=-1, keepdims=True) > 0.5).astype(f32)   # rows below level
    # fc2dpd on the VPU (multiply + lane reduce):
    u = _softplus(jnp.sum(dp * wdpd_row, axis=-1, keepdims=True))      # [(L-1)N, 1]
    e = jnp.exp(u - jnp.max(u)) * below                 # shared shift keeps softmax exact
    denom = jnp.dot(seg, e, preferred_element_type=f32)                # segment sums
    dpd = e * pl.reciprocal(denom + (1.0 - below), approx=True)        # [(L-1)N, 1]

    # TD scaling aligned with g_ext rows: [BU/self/TD rows for all levels | identity rows]
    d_scale = jnp.concatenate(
        [dpd + (1.0 - below), jnp.ones((2 * N_TS, 1), f32)], axis=0)   # [(L+1)N, 1]

    psum_cols = None
    for b in range(NBLOCK):
        base = ROW_WBASE + b * ROW_WSTRIDE
        wl = stat_ref[base + OFF_WL:base + OFF_WL + T, 0:U0]
        wl1 = stat_ref[base + OFF_WL1:base + OFF_WL1 + U0, 0:U0]
        wqkv = stat_ref[base + OFF_WQKV:base + OFF_WQKV + U0, 0:3 * U1]
        bqkv = stat_ref[base + OFF_BQKV:base + OFF_BQKV + 1, 0:3 * U1]
        wo = stat_ref[base + OFF_WO:base + OFF_WO + U2, 0:U2]
        bo = stat_ref[base + OFF_BO:base + OFF_BO + 1, 0:U2]
        wf20 = stat_ref[base + OFF_WF20:base + OFF_WF20 + U2, 0:T]

        h1 = _softplus(jnp.dot(x, wl, preferred_element_type=f32))          # [N, U0]
        h2 = _softplus(jnp.dot(h1, wl1, preferred_element_type=f32))        # [N, U0]

        # hierarchical rearrangement (all levels) + identity rows for own-level queries,
        # TD-scaled, then one fused Q/K/V projection (+bias) for everything.
        xm = d_scale * jnp.dot(g_ext, h2, preferred_element_type=f32)       # [(L+1)N, U0]
        qkv = jnp.dot(xm, wqkv, preferred_element_type=f32) + bqkv          # [(L+1)N, 3U]
        k_all = qkv[0:LEVELS * N_TS, U1:2 * U1]                             # [L*N, U1]
        v_all = qkv[0:LEVELS * N_TS, 2 * U1:3 * U1]                         # [L*N, U2]
        q_own = qkv[LEVELS * N_TS:, 0:U1]                                   # [N, U1]
        # (the attention mask keeps only each node's own-level query row, and that row
        #  of the rearranged input equals h2, so q_own is the only query we need)

        # per-head scores for every key level: pointwise q*k, head pooling on the MXU
        prod = jnp.concatenate([q_own] * LEVELS, axis=0) * k_all            # [L*N, U1]
        s_all = jnp.dot(prod, head_pool, preferred_element_type=f32)        # [L*N, H]

        # softmax over key levels: single batched exp + approx reciprocal
        s_j = [s_all[j * N_TS:(j + 1) * N_TS, :] for j in range(LEVELS)]
        m = s_j[0]
        for j in range(1, LEVELS):
            m = jnp.maximum(m, s_j[j])
        e_all = jnp.exp(s_all - jnp.concatenate([m] * LEVELS, axis=0))      # [L*N, H]
        den = e_all[0:N_TS, :]
        for j in range(1, LEVELS):
            den = den + e_all[j * N_TS:(j + 1) * N_TS, :]
        inv_den = pl.reciprocal(den, approx=True)                           # [N, H]
        pk_all = e_all * jnp.concatenate([inv_den] * LEVELS, axis=0)        # [L*N, H]

        # context: head weights expanded over DV lanes via constant matmul, times V,
        # summed over key levels (sublane-aligned slices -> plain VPU adds)
        pkv = jnp.dot(pk_all, head_exp, preferred_element_type=f32) * v_all  # [L*N, U2]
        ctx = pkv[0:N_TS, :]
        for j in range(1, LEVELS):
            ctx = ctx + pkv[j * N_TS:(j + 1) * N_TS, :]                      # [N, U2]

        # linears[-1] applied per level then summed over levels (bias counted LEVELS x,
        # matching the PyTorch `self.linears[-1](x)` followed by `.sum(dim=1)`)
        h3 = _softplus(jnp.dot(ctx, wo, preferred_element_type=f32)
                       + float(LEVELS) * bo)                                 # [N, U2]
        h4 = _softplus(jnp.dot(h3, wf20, preferred_element_type=f32))        # [N, T]
        x = x + h4

        if b == NBLOCK - 1:                           # p_attn_sum of the last block
            psum_cols = jnp.concatenate(
                [jnp.mean(pk_all[j * N_TS:(j + 1) * N_TS, :], axis=1, keepdims=True)
                 for j in range(LEVELS)], axis=1)                            # [N, L]

    # final fc2 on the VPU (multiply + lane reduce), then M reconciliation matmul
    yl = jnp.sum(x * wf2_row, axis=-1, keepdims=True)                        # [N, 1]
    y = jnp.dot(m_mat, yl, preferred_element_type=f32)                       # [N, 1]

    dpd_cols = jnp.concatenate(
        [dpd[l * N_TS:(l + 1) * N_TS, :] for l in range(LEVELS - 1)], axis=1)  # [N, L-1]

    # single lane-dense store of the packed output slab
    pad = jnp.zeros((N_TS, OUT_LANES - OUT_USED), f32)
    out_ref[...] = jnp.concatenate([y, psum_cols, dpd_cols, pad], axis=1)


# ----------------------------------------------------------------------------
# Structure matrices (hierarchy bookkeeping done once, in numpy glue)
# ----------------------------------------------------------------------------
def build_structure():
    parent = [-1] * N_TS
    nxt = 1
    for pnode, c in enumerate(PARENTS_NUMBER_LIST):
        for _ in range(c):
            parent[nxt] = pnode
            nxt += 1
    level = [0] * N_TS
    for i in range(1, N_TS):
        level[i] = level[parent[i]] + 1
    starts = np.concatenate([[0], np.cumsum(HIER)]).astype(int)

    def anc(n, l):
        while level[n] > l:
            n = parent[n]
        return n

    G = np.zeros((LEVELS, N_TS, N_TS), np.float32)
    seg = np.zeros((LEVELS - 1, N_TS, N_TS), np.float32)
    for l in range(LEVELS):
        s, e = starts[l], starts[l + 1]
        for r in range(s, e):                # x_self: identity rows
            G[l, r, r] = 1.0
        if l > 0:                            # x_BU: ancestor rows sum level-l descendants
            for c in range(s, e):
                for lp in range(l):
                    G[l, anc(c, lp), c] = 1.0
        if l < LEVELS - 1:                   # x_TD: descendant rows pick level-l ancestor
            for r in range(e, N_TS):
                G[l, r, anc(r, l)] = 1.0
            for r in range(e, N_TS):
                for c in range(e, N_TS):
                    if level[r] == level[c] and anc(r, l) == anc(c, l):
                        seg[l, r, c] = 1.0

    # deterministic reconciliation matrix M (bottom-up summing): [N_TS, N_TS]
    nb = HIER[-1]
    bstart = starts[LEVELS - 1]
    S = np.zeros((N_TS, nb), np.float32)
    for j in range(nb):
        r = bstart + j
        while r != -1:
            S[r, j] = 1.0
            r = parent[r]
    P = np.zeros((nb, N_TS), np.float32)
    P[:, bstart:] = np.eye(nb, dtype=np.float32)
    M = S @ P

    # rearrangement for all levels + identity rows (own-level / query rows)
    g_ext = np.concatenate([G.reshape(LEVELS * N_TS, N_TS),
                            np.eye(N_TS, dtype=np.float32)], axis=0)

    # block-diagonal segment-sum matrix over the (LEVELS-1) stacked dpd levels
    seg_bd = np.zeros(((LEVELS - 1) * N_TS, (LEVELS - 1) * N_TS), np.float32)
    for l in range(LEVELS - 1):
        seg_bd[l * N_TS:(l + 1) * N_TS, l * N_TS:(l + 1) * N_TS] = seg[l]

    return dict(g_ext=g_ext, m_mat=M, seg_bd=seg_bd)


# ----------------------------------------------------------------------------
# Deterministic parameter init (shapes from Model.__init__ / MultiHeadedAttention)
# ----------------------------------------------------------------------------
def init_params(key):
    def lin_w(k, out_f, in_f):
        b = 1.0 / math.sqrt(in_f)
        return jax.random.uniform(k, (out_f, in_f), jnp.float32, -b, b)

    def lin_b(k, out_f, in_f):
        b = 1.0 / math.sqrt(in_f)
        return jax.random.uniform(k, (1, out_f), jnp.float32, -b, b)

    keys = iter(jax.random.split(key, 64))
    p = dict()
    p['w_dpd'] = lin_w(next(keys), HORIZON, TIME_STEP)               # fc2dpd, no bias
    wl, wl1, wqkv, bqkv, wo, bo, wf20 = [], [], [], [], [], [], []
    for _ in range(NBLOCK):
        wl.append(lin_w(next(keys), U0, TIME_STEP).T)                # fcLSTM
        wl1.append(lin_w(next(keys), U0, U0).T)                      # fcLSTM1
        wq = lin_w(next(keys), U1, U0).T; bq = lin_b(next(keys), U1, U0)
        wk = lin_w(next(keys), U1, U0).T; bk = lin_b(next(keys), U1, U0)
        wv = lin_w(next(keys), U2, U0).T; bv = lin_b(next(keys), U2, U0)
        wo_ = lin_w(next(keys), U2, U2).T; bo_ = lin_b(next(keys), U2, U2)
        wqkv.append(jnp.concatenate([wq, wk, wv], axis=1))           # [U0, 3U]
        bqkv.append(jnp.concatenate([bq, bk, bv], axis=1))           # [1, 3U]
        wo.append(wo_); bo.append(bo_)
        wf20.append(lin_w(next(keys), TIME_STEP, U2).T)              # fc20
    p['w_fc2'] = lin_w(next(keys), HORIZON, TIME_STEP)               # fc2, no bias
    p.update(w_lstm=wl, w_lstm1=wl1, wqkv=wqkv, bqkv=bqkv, wo=wo, bo=bo, w_fc20=wf20)
    return p


def pack_static(params, struct):
    """Pack weights + structure constants into one lane-dense [STAT_ROWS, 128] slab."""
    slab = np.zeros((STAT_ROWS, OUT_LANES), np.float32)

    def put(r, a):
        a = np.asarray(a, np.float32)
        slab[r:r + a.shape[0], 0:a.shape[1]] = a

    put(ROW_WVEC, np.asarray(params['w_dpd']))
    put(ROW_WVEC + 1, np.asarray(params['w_fc2']))
    put(ROW_GEXT, struct['g_ext'])
    put(ROW_M, struct['m_mat'])
    put(ROW_SEG, struct['seg_bd'])

    head_pool = np.zeros((U1, HEADS), np.float32)
    head_exp = np.zeros((HEADS, U2), np.float32)
    inv_sqrt_dk = 1.0 / math.sqrt(DK)
    for h in range(HEADS):
        head_pool[h * DK:(h + 1) * DK, h] = inv_sqrt_dk
        head_exp[h, h * DV:(h + 1) * DV] = 1.0
    put(ROW_POOL, head_pool)
    put(ROW_EXP, head_exp)

    for b in range(NBLOCK):
        base = ROW_WBASE + b * ROW_WSTRIDE
        put(base + OFF_WL, params['w_lstm'][b])
        put(base + OFF_WL1, params['w_lstm1'][b])
        put(base + OFF_WQKV, params['wqkv'][b])
        put(base + OFF_BQKV, params['bqkv'][b])
        put(base + OFF_WO, params['wo'][b])
        put(base + OFF_BO, params['bo'][b])
        put(base + OFF_WF20, params['w_fc20'][b])
    return jnp.asarray(slab)


# ----------------------------------------------------------------------------
# Forward wrapper (glue folded into the same jit as the pallas_call)
# ----------------------------------------------------------------------------
def sahts_forward(x2d, dpfrom, static_slab, noise_key):
    # x2d: [time_step, N_TS] (2-D PyTorch input path); DPfrom: [time_step, N_TS, LEVELS-1]
    x3 = jnp.transpose(x2d)[:, :, None]                              # [N_TS, T, 1]
    s0 = sum(HIER[:NOI_LEVEL - 1]); s1 = sum(HIER[:NOI_LEVEL])
    noise = jax.random.normal(noise_key, x3.shape) * NOI_STD
    ones_noise = jnp.ones_like(x3).at[s0:s1].set(noise[s0:s1] + 1.0)
    x0 = (x3 * ones_noise)[:, :, 0]                                  # [N_TS, T]
    dp = jnp.transpose(dpfrom, (2, 1, 0)).reshape((LEVELS - 1) * N_TS, TIME_STEP)
    dyn = jnp.concatenate([x0, dp], axis=0)                          # [LEVELS*N_TS, T]

    # TODO(synk): DPmask and self.DPD_overall are built in the PyTorch forward but never
    # consumed (attention is called without a mask), so they are not reproduced here.

    vspec = pl.BlockSpec(memory_space=pltpu.MemorySpace.VMEM)
    slab = pl.pallas_call(
        sahts_kernel,
        out_shape=jax.ShapeDtypeStruct((N_TS, OUT_LANES), jnp.float32),
        in_specs=[vspec, vspec],
        out_specs=vspec,
    )(dyn, static_slab)

    # unpack the lane-dense output slab
    y = slab[:, 0]                                                   # [N_TS]
    psum = slab[:, 1:1 + LEVELS]                                     # [N_TS, LEVELS]
    dpd = jnp.transpose(slab[:, 1 + LEVELS:1 + LEVELS + (LEVELS - 1)])[:, :, None]
    return_loss = jnp.zeros((1,), jnp.float32)
    return y, psum, return_loss, dpd


sahts_forward_jit = jax.jit(sahts_forward)


if __name__ == "__main__":
    key = jax.random.PRNGKey(0)
    k_x, k_dp, k_par, k_noise = jax.random.split(key, 4)
    x2d = jax.random.normal(k_x, (TIME_STEP, N_TS), jnp.float32)
    dpfrom = jax.random.uniform(k_dp, (TIME_STEP, N_TS, LEVELS - 1), jnp.float32)

    struct = build_structure()
    params = init_params(k_par)
    static_slab = pack_static(params, struct)        # packed once, reused every call

    out = sahts_forward_jit(x2d, dpfrom, static_slab, k_noise)
    out = jax.block_until_ready(out)
    y, p_attn_sum, ret_loss, x_dpd_overall = out

    # mirrors the internal PyTorch sanity check: masked attention rows sum to 1
    assert np.all(np.abs(np.asarray(p_attn_sum).sum(axis=1) - 1.0) < 1e-2)
    assert y.shape == (N_TS,)
    assert x_dpd_overall.shape == (LEVELS - 1, N_TS, 1)
    print("KERNEL_OK")
</pallas_src>

<mosaic_0001>
module attributes {stable_mosaic.version = 11 : i64} {
  func.func @sahts_kernel(%arg0: memref<24x8xf32, #tpu.memory_space<vmem>>, %arg1: memref<408x128xf32, #tpu.memory_space<vmem>>, %arg2: memref<8x128xf32, #tpu.memory_space<vmem>>) attributes {dimension_semantics = [], scalar_prefetch = 0 : i64, scratch_operands = 0 : i64, tpu.core_type = #tpu.core_type<tc>} {
    %c0 = arith.constant 0 : index
    %c0_0 = arith.constant 0 : index
    %0 = vector.load %arg0[%c0, %c0_0] : memref<24x8xf32, #tpu.memory_space<vmem>>, vector<8x8xf32>
    %c8 = arith.constant 8 : index
    %c0_1 = arith.constant 0 : index
    %1 = vector.load %arg0[%c8, %c0_1] : memref<24x8xf32, #tpu.memory_space<vmem>>, vector<16x8xf32>
    %c0_2 = arith.constant 0 : index
    %c0_3 = arith.constant 0 : index
    %2 = vector.load %arg1[%c0_2, %c0_3] : memref<408x128xf32, #tpu.memory_space<vmem>>, vector<1x8xf32>
    %c1 = arith.constant 1 : index
    %c0_4 = arith.constant 0 : index
    %3 = vector.load %arg1[%c1, %c0_4] : memref<408x128xf32, #tpu.memory_space<vmem>>, vector<1x8xf32>
    %c8_5 = arith.constant 8 : index
    %c0_6 = arith.constant 0 : index
    %4 = vector.load %arg1[%c8_5, %c0_6] : memref<408x128xf32, #tpu.memory_space<vmem>>, vector<32x8xf32>
    %c40 = arith.constant 40 : index
    %c0_7 = arith.constant 0 : index
    %5 = vector.load %arg1[%c40, %c0_7] : memref<408x128xf32, #tpu.memory_space<vmem>>, vector<8x8xf32>
    %c48 = arith.constant 48 : index
    %c0_8 = arith.constant 0 : index
    %6 = vector.load %arg1[%c48, %c0_8] : memref<408x128xf32, #tpu.memory_space<vmem>>, vector<16x16xf32>
    %c64 = arith.constant 64 : index
    %c0_9 = arith.constant 0 : index
    %7 = vector.load %arg1[%c64, %c0_9] : memref<408x128xf32, #tpu.memory_space<vmem>>, vector<32x4xf32>
    %c96 = arith.constant 96 : index
    %c0_10 = arith.constant 0 : index
    %8 = vector.load %arg1[%c96, %c0_10] : memref<408x128xf32, #tpu.memory_space<vmem>>, vector<4x32xf32>
    %cst = arith.constant dense<0.000000e+00> : vector<16xf32>
    %9 = vector.multi_reduction <add>, %6, %cst [1] : vector<16x16xf32> to vector<16xf32>
    %10 = vector.shape_cast %9 : vector<16xf32> to vector<16x1xf32>
    %cst_11 = arith.constant 5.000000e-01 : f32
    %11 = vector.broadcast %cst_11 : f32 to vector<16x1xf32>
    %12 = arith.cmpf ogt, %10, %11 : vector<16x1xf32>
    %13 = arith.extui %12 : vector<16x1xi1> to vector<16x1xi32>
    %14 = arith.sitofp %13 : vector<16x1xi32> to vector<16x1xf32>
    %15 = vector.broadcast %2 : vector<1x8xf32> to vector<16x8xf32>
    %16 = arith.mulf %1, %15 : vector<16x8xf32>
    %cst_12 = arith.constant dense<0.000000e+00> : vector<16xf32>
    %17 = vector.multi_reduction <add>, %16, %cst_12 [1] : vector<16x8xf32> to vector<16xf32>
    %18 = vector.shape_cast %17 : vector<16xf32> to vector<16x1xf32>
    %cst_13 = arith.constant 0.000000e+00 : f32
    %19 = vector.broadcast %cst_13 : f32 to vector<16x1xf32>
    %20 = arith.maximumf %18, %19 : vector<16x1xf32>
    %21 = math.absf %18 : vector<16x1xf32>
    %cst_14 = arith.constant 0.000000e+00 : f32
    %22 = vector.broadcast %cst_14 : f32 to vector<16x1xf32>
    %23 = arith.subf %22, %21 : vector<16x1xf32>
    %24 = math.exp %23 : vector<16x1xf32>
    %25 = math.log1p %24 : vector<16x1xf32>
    %26 = arith.addf %20, %25 : vector<16x1xf32>
    %27 = vector.shape_cast %26 : vector<16x1xf32> to vector<1x16x1xf32>
    %cst_15 = arith.constant dense<0xFF800000> : vector<1xf32>
    %28 = vector.multi_reduction <maximumf>, %27, %cst_15 [1, 2] : vector<1x16x1xf32> to vector<1xf32>
    %29 = vector.shape_cast %28 : vector<1xf32> to vector<1x1x1xf32>
    %30 = vector.extract %29[0, 0, 0] : f32 from vector<1x1x1xf32>
    %31 = vector.broadcast %30 : f32 to vector<16x1xf32>
    %32 = arith.subf %26, %31 : vector<16x1xf32>
    %33 = math.exp %32 : vector<16x1xf32>
    %34 = arith.mulf %33, %14 : vector<16x1xf32>
    %cst_16 = arith.constant dense<0.000000e+00> : vector<16x1xf32>
    %35 = tpu.matmul %6, %34, %cst_16 {dimension_numbers = #tpu.dot_dimension_numbers<[1], [0], [0], [1], [0, 0, 1, 1], [], []>} : vector<16x16xf32>, vector<16x1xf32>, vector<16x1xf32> -> vector<16x1xf32>
    %cst_17 = arith.constant 1.000000e+00 : f32
    %36 = vector.broadcast %cst_17 : f32 to vector<16x1xf32>
    %37 = arith.subf %36, %14 : vector<16x1xf32>
    %38 = arith.addf %35, %37 : vector<16x1xf32>
    %39 = tpu.reciprocal %38 {approx = true} : vector<16x1xf32> -> vector<16x1xf32>
    %40 = arith.mulf %34, %39 : vector<16x1xf32>
    %cst_18 = arith.constant 1.000000e+00 : f32
    %41 = vector.broadcast %cst_18 : f32 to vector<16x1xf32>
    %42 = arith.subf %41, %14 : vector<16x1xf32>
    %43 = arith.addf %40, %42 : vector<16x1xf32>
    %cst_19 = arith.constant 1.000000e+00 : f32
    %44 = vector.broadcast %cst_19 : f32 to vector<16x1xf32>
    %45 = tpu.concatenate %43, %44 in 0 : vector<16x1xf32>, vector<16x1xf32> -> vector<32x1xf32>
    %c104 = arith.constant 104 : index
    %c0_20 = arith.constant 0 : index
    %46 = vector.load %arg1[%c104, %c0_20] : memref<408x128xf32, #tpu.memory_space<vmem>>, vector<8x32xf32>
    %c112 = arith.constant 112 : index
    %c0_21 = arith.constant 0 : index
    %47 = vector.load %arg1[%c112, %c0_21] : memref<408x128xf32, #tpu.memory_space<vmem>>, vector<32x32xf32>
    %c144 = arith.constant 144 : index
    %c0_22 = arith.constant 0 : index
    %48 = vector.load %arg1[%c144, %c0_22] : memref<408x128xf32, #tpu.memory_space<vmem>>, vector<32x96xf32>
    %c176 = arith.constant 176 : index
    %c0_23 = arith.constant 0 : index
    %49 = vector.load %arg1[%c176, %c0_23] : memref<408x128xf32, #tpu.memory_space<vmem>>, vector<1x96xf32>
    %c184 = arith.constant 184 : index
    %c0_24 = arith.constant 0 : index
    %50 = vector.load %arg1[%c184, %c0_24] : memref<408x128xf32, #tpu.memory_space<vmem>>, vector<32x32xf32>
    %c216 = arith.constant 216 : index
    %c0_25 = arith.constant 0 : index
    %51 = vector.load %arg1[%c216, %c0_25] : memref<408x128xf32, #tpu.memory_space<vmem>>, vector<1x32xf32>
    %c224 = arith.constant 224 : index
    %c0_26 = arith.constant 0 : index
    %52 = vector.load %arg1[%c224, %c0_26] : memref<408x128xf32, #tpu.memory_space<vmem>>, vector<32x8xf32>
    %cst_27 = arith.constant dense<0.000000e+00> : vector<8x32xf32>
    %53 = tpu.matmul %0, %46, %cst_27 {dimension_numbers = #tpu.dot_dimension_numbers<[1], [0], [0], [1], [0, 0, 1, 1], [], []>} : vector<8x8xf32>, vector<8x32xf32>, vector<8x32xf32> -> vector<8x32xf32>
    %cst_28 = arith.constant 0.000000e+00 : f32
    %54 = vector.broadcast %cst_28 : f32 to vector<8x32xf32>
    %55 = arith.maximumf %53, %54 : vector<8x32xf32>
    %56 = math.absf %53 : vector<8x32xf32>
    %cst_29 = arith.constant 0.000000e+00 : f32
    %57 = vector.broadcast %cst_29 : f32 to vector<8x32xf32>
    %58 = arith.subf %57, %56 : vector<8x32xf32>
    %59 = math.exp %58 : vector<8x32xf32>
    %60 = math.log1p %59 : vector<8x32xf32>
    %61 = arith.addf %55, %60 : vector<8x32xf32>
    %cst_30 = arith.constant dense<0.000000e+00> : vector<8x32xf32>
    %62 = tpu.matmul %61, %47, %cst_30 {dimension_numbers = #tpu.dot_dimension_numbers<[1], [0], [0], [1], [0, 0, 1, 1], [], []>} : vector<8x32xf32>, vector<32x32xf32>, vector<8x32xf32> -> vector<8x32xf32>
    %cst_31 = arith.constant 0.000000e+00 : f32
    %63 = vector.broadcast %cst_31 : f32 to vector<8x32xf32>
    %64 = arith.maximumf %62, %63 : vector<8x32xf32>
    %65 = math.absf %62 : vector<8x32xf32>
    %cst_32 = arith.constant 0.000000e+00 : f32
    %66 = vector.broadcast %cst_32 : f32 to vector<8x32xf32>
    %67 = arith.subf %66, %65 : vector<8x32xf32>
    %68 = math.exp %67 : vector<8x32xf32>
    %69 = math.log1p %68 : vector<8x32xf32>
    %70 = arith.addf %64, %69 : vector<8x32xf32>
    %cst_33 = arith.constant dense<0.000000e+00> : vector<32x32xf32>
    %71 = tpu.matmul %4, %70, %cst_33 {dimension_numbers = #tpu.dot_dimension_numbers<[1], [0], [0], [1], [0, 0, 1, 1], [], []>} : vector<32x8xf32>, vector<8x32xf32>, vector<32x32xf32> -> vector<32x32xf32>
    %72 = vector.broadcast %45 : vector<32x1xf32> to vector<32x32xf32>
    %73 = arith.mulf %72, %71 : vector<32x32xf32>
    %cst_34 = arith.constant dense<0.000000e+00> : vector<32x96xf32>
    %74 = tpu.matmul %73, %48, %cst_34 {dimension_numbers = #tpu.dot_dimension_numbers<[1], [0], [0], [1], [0, 0, 1, 1], [], []>} : vector<32x32xf32>, vector<32x96xf32>, vector<32x96xf32> -> vector<32x96xf32>
    %75 = vector.broadcast %49 : vector<1x96xf32> to vector<32x96xf32>
    %76 = arith.addf %74, %75 : vector<32x96xf32>
    %77 = vector.extract_strided_slice %76 {offsets = [0, 32], sizes = [24, 32], strides = [1, 1]} : vector<32x96xf32> to vector<24x32xf32>
    %78 = vector.extract_strided_slice %76 {offsets = [0, 64], sizes = [24, 32], strides = [1, 1]} : vector<32x96xf32> to vector<24x32xf32>
    %79 = vector.extract_strided_slice %76 {offsets = [24, 0], sizes = [8, 32], strides = [1, 1]} : vector<32x96xf32> to vector<8x32xf32>
    %80 = tpu.concatenate %79, %79, %79 in 0 : vector<8x32xf32>, vector<8x32xf32>, vector<8x32xf32> -> vector<24x32xf32>
    %81 = arith.mulf %80, %77 : vector<24x32xf32>
    %cst_35 = arith.constant dense<0.000000e+00> : vector<24x4xf32>
    %82 = tpu.matmul %81, %7, %cst_35 {dimension_numbers = #tpu.dot_dimension_numbers<[1], [0], [0], [1], [0, 0, 1, 1], [], []>} : vector<24x32xf32>, vector<32x4xf32>, vector<24x4xf32> -> vector<24x4xf32>
    %83 = vector.extract_strided_slice %82 {offsets = [0, 0], sizes = [8, 4], strides = [1, 1]} : vector<24x4xf32> to vector<8x4xf32>
    %84 = vector.extract_strided_slice %82 {offsets = [8, 0], sizes = [8, 4], strides = [1, 1]} : vector<24x4xf32> to vector<8x4xf32>
    %85 = vector.extract_strided_slice %82 {offsets = [16, 0], sizes = [8, 4], strides = [1, 1]} : vector<24x4xf32> to vector<8x4xf32>
    %86 = arith.maximumf %83, %84 : vector<8x4xf32>
    %87 = arith.maximumf %86, %85 : vector<8x4xf32>
    %88 = tpu.concatenate %87, %87, %87 in 0 : vector<8x4xf32>, vector<8x4xf32>, vector<8x4xf32> -> vector<24x4xf32>
    %89 = arith.subf %82, %88 : vector<24x4xf32>
    %90 = math.exp %89 : vector<24x4xf32>
    %91 = vector.extract_strided_slice %90 {offsets = [0, 0], sizes = [8, 4], strides = [1, 1]} : vector<24x4xf32> to vector<8x4xf32>
    %92 = vector.extract_strided_slice %90 {offsets = [8, 0], sizes = [8, 4], strides = [1, 1]} : vector<24x4xf32> to vector<8x4xf32>
    %93 = arith.addf %91, %92 : vector<8x4xf32>
    %94 = vector.extract_strided_slice %90 {offsets = [16, 0], sizes = [8, 4], strides = [1, 1]} : vector<24x4xf32> to vector<8x4xf32>
    %95 = arith.addf %93, %94 : vector<8x4xf32>
    %96 = tpu.reciprocal %95 {approx = true} : vector<8x4xf32> -> vector<8x4xf32>
    %97 = tpu.concatenate %96, %96, %96 in 0 : vector<8x4xf32>, vector<8x4xf32>, vector<8x4xf32> -> vector<24x4xf32>
    %98 = arith.mulf %90, %97 : vector<24x4xf32>
    %cst_36 = arith.constant dense<0.000000e+00> : vector<24x32xf32>
    %99 = tpu.matmul %98, %8, %cst_36 {dimension_numbers = #tpu.dot_dimension_numbers<[1], [0], [0], [1], [0, 0, 1, 1], [], []>} : vector<24x4xf32>, vector<4x32xf32>, vector<24x32xf32> -> vector<24x32xf32>
    %100 = arith.mulf %99, %78 : vector<24x32xf32>
    %101 = vector.extract_strided_slice %100 {offsets = [0, 0], sizes = [8, 32], strides = [1, 1]} : vector<24x32xf32> to vector<8x32xf32>
    %102 = vector.extract_strided_slice %100 {offsets = [8, 0], sizes = [8, 32], strides = [1, 1]} : vector<24x32xf32> to vector<8x32xf32>
    %103 = arith.addf %101, %102 : vector<8x32xf32>
    %104 = vector.extract_strided_slice %100 {offsets = [16, 0], sizes = [8, 32], strides = [1, 1]} : vector<24x32xf32> to vector<8x32xf32>
    %105 = arith.addf %103, %104 : vector<8x32xf32>
    %cst_37 = arith.constant dense<0.000000e+00> : vector<8x32xf32>
    %106 = tpu.matmul %105, %50, %cst_37 {dimension_numbers = #tpu.dot_dimension_numbers<[1], [0], [0], [1], [0, 0, 1, 1], [], []>} : vector<8x32xf32>, vector<32x32xf32>, vector<8x32xf32> -> vector<8x32xf32>
    %cst_38 = arith.constant 3.000000e+00 : f32
    %107 = vector.broadcast %cst_38 : f32 to vector<1x32xf32>
    %108 = arith.mulf %107, %51 : vector<1x32xf32>
    %109 = vector.broadcast %108 : vector<1x32xf32> to vector<8x32xf32>
    %110 = arith.addf %106, %109 : vector<8x32xf32>
    %cst_39 = arith.constant 0.000000e+00 : f32
    %111 = vector.broadcast %cst_39 : f32 to vector<8x32xf32>
    %112 = arith.maximumf %110, %111 : vector<8x32xf32>
    %113 = math.absf %110 : vector<8x32xf32>
    %cst_40 = arith.constant 0.000000e+00 : f32
    %114 = vector.broadcast %cst_40 : f32 to vector<8x32xf32>
    %115 = arith.subf %114, %113 : vector<8x32xf32>
    %116 = math.exp %115 : vector<8x32xf32>
    %117 = math.log1p %116 : vector<8x32xf32>
    %118 = arith.addf %112, %117 : vector<8x32xf32>
    %cst_41 = arith.constant dense<0.000000e+00> : vector<8x8xf32>
    %119 = tpu.matmul %118, %52, %cst_41 {dimension_numbers = #tpu.dot_dimension_numbers<[1], [0], [0], [1], [0, 0, 1, 1], [], []>} : vector<8x32xf32>, vector<32x8xf32>, vector<8x8xf32> -> vector<8x8xf32>
    %cst_42 = arith.constant 0.000000e+00 : f32
    %120 = vector.broadcast %cst_42 : f32 to vector<8x8xf32>
    %121 = arith.maximumf %119, %120 : vector<8x8xf32>
    %122 = math.absf %119 : vector<8x8xf32>
    %cst_43 = arith.constant 0.000000e+00 : f32
    %123 = vector.broadcast %cst_43 : f32 to vector<8x8xf32>
    %124 = arith.subf %123, %122 : vector<8x8xf32>
    %125 = math.exp %124 : vector<8x8xf32>
    %126 = math.log1p %125 : vector<8x8xf32>
    %127 = arith.addf %121, %126 : vector<8x8xf32>
    %128 = arith.addf %0, %127 : vector<8x8xf32>
    %c256 = arith.constant 256 : index
    %c0_44 = arith.constant 0 : index
    %129 = vector.load %arg1[%c256, %c0_44] : memref<408x128xf32, #tpu.memory_space<vmem>>, vector<8x32xf32>
    %c264 = arith.constant 264 : index
    %c0_45 = arith.constant 0 : index
    %130 = vector.load %arg1[%c264, %c0_45] : memref<408x128xf32, #tpu.memory_space<vmem>>, vector<32x32xf32>
    %c296 = arith.constant 296 : index
    %c0_46 = arith.constant 0 : index
    %131 = vector.load %arg1[%c296, %c0_46] : memref<408x128xf32, #tpu.memory_space<vmem>>, vector<32x96xf32>
    %c328 = arith.constant 328 : index
    %c0_47 = arith.constant 0 : index
    %132 = vector.load %arg1[%c328, %c0_47] : memref<408x128xf32, #tpu.memory_space<vmem>>, vector<1x96xf32>
    %c336 = arith.constant 336 : index
    %c0_48 = arith.constant 0 : index
    %133 = vector.load %arg1[%c336, %c0_48] : memref<408x128xf32, #tpu.memory_space<vmem>>, vector<32x32xf32>
    %c368 = arith.constant 368 : index
    %c0_49 = arith.constant 0 : index
    %134 = vector.load %arg1[%c368, %c0_49] : memref<408x128xf32, #tpu.memory_space<vmem>>, vector<1x32xf32>
    %c376 = arith.constant 376 : index
    %c0_50 = arith.constant 0 : index
    %135 = vector.load %arg1[%c376, %c0_50] : memref<408x128xf32, #tpu.memory_space<vmem>>, vector<32x8xf32>
    %cst_51 = arith.constant dense<0.000000e+00> : vector<8x32xf32>
    %136 = tpu.matmul %128, %129, %cst_51 {dimension_numbers = #tpu.dot_dimension_numbers<[1], [0], [0], [1], [0, 0, 1, 1], [], []>} : vector<8x8xf32>, vector<8x32xf32>, vector<8x32xf32> -> vector<8x32xf32>
    %cst_52 = arith.constant 0.000000e+00 : f32
    %137 = vector.broadcast %cst_52 : f32 to vector<8x32xf32>
    %138 = arith.maximumf %136, %137 : vector<8x32xf32>
    %139 = math.absf %136 : vector<8x32xf32>
    %cst_53 = arith.constant 0.000000e+00 : f32
    %140 = vector.broadcast %cst_53 : f32 to vector<8x32xf32>
    %141 = arith.subf %140, %139 : vector<8x32xf32>
    %142 = math.exp %141 : vector<8x32xf32>
    %143 = math.log1p %142 : vector<8x32xf32>
    %144 = arith.addf %138, %143 : vector<8x32xf32>
    %cst_54 = arith.constant dense<0.000000e+00> : vector<8x32xf32>
    %145 = tpu.matmul %144, %130, %cst_54 {dimension_numbers = #tpu.dot_dimension_numbers<[1], [0], [0], [1], [0, 0, 1, 1], [], []>} : vector<8x32xf32>, vector<32x32xf32>, vector<8x32xf32> -> vector<8x32xf32>
    %cst_55 = arith.constant 0.000000e+00 : f32
    %146 = vector.broadcast %cst_55 : f32 to vector<8x32xf32>
    %147 = arith.maximumf %145, %146 : vector<8x32xf32>
    %148 = math.absf %145 : vector<8x32xf32>
    %cst_56 = arith.constant 0.000000e+00 : f32
    %149 = vector.broadcast %cst_56 : f32 to vector<8x32xf32>
    %150 = arith.subf %149, %148 : vector<8x32xf32>
    %151 = math.exp %150 : vector<8x32xf32>
    %152 = math.log1p %151 : vector<8x32xf32>
    %153 = arith.addf %147, %152 : vector<8x32xf32>
    %cst_57 = arith.constant dense<0.000000e+00> : vector<32x32xf32>
    %154 = tpu.matmul %4, %153, %cst_57 {dimension_numbers = #tpu.dot_dimension_numbers<[1], [0], [0], [1], [0, 0, 1, 1], [], []>} : vector<32x8xf32>, vector<8x32xf32>, vector<32x32xf32> -> vector<32x32xf32>
    %155 = vector.broadcast %45 : vector<32x1xf32> to vector<32x32xf32>
    %156 = arith.mulf %155, %154 : vector<32x32xf32>
    %cst_58 = arith.constant dense<0.000000e+00> : vector<32x96xf32>
    %157 = tpu.matmul %156, %131, %cst_58 {dimension_numbers = #tpu.dot_dimension_numbers<[1], [0], [0], [1], [0, 0, 1, 1], [], []>} : vector<32x32xf32>, vector<32x96xf32>, vector<32x96xf32> -> vector<32x96xf32>
    %158 = vector.broadcast %132 : vector<1x96xf32> to vector<32x96xf32>
    %159 = arith.addf %157, %158 : vector<32x96xf32>
    %160 = vector.extract_strided_slice %159 {offsets = [0, 32], sizes = [24, 32], strides = [1, 1]} : vector<32x96xf32> to vector<24x32xf32>
    %161 = vector.extract_strided_slice %159 {offsets = [0, 64], sizes = [24, 32], strides = [1, 1]} : vector<32x96xf32> to vector<24x32xf32>
    %162 = vector.extract_strided_slice %159 {offsets = [24, 0], sizes = [8, 32], strides = [1, 1]} : vector<32x96xf32> to vector<8x32xf32>
    %163 = tpu.concatenate %162, %162, %162 in 0 : vector<8x32xf32>, vector<8x32xf32>, vector<8x32xf32> -> vector<24x32xf32>
    %164 = arith.mulf %163, %160 : vector<24x32xf32>
    %cst_59 = arith.constant dense<0.000000e+00> : vector<24x4xf32>
    %165 = tpu.matmul %164, %7, %cst_59 {dimension_numbers = #tpu.dot_dimension_numbers<[1], [0], [0], [1], [0, 0, 1, 1], [], []>} : vector<24x32xf32>, vector<32x4xf32>, vector<24x4xf32> -> vector<24x4xf32>
    %166 = vector.extract_strided_slice %165 {offsets = [0, 0], sizes = [8, 4], strides = [1, 1]} : vector<24x4xf32> to vector<8x4xf32>
    %167 = vector.extract_strided_slice %165 {offsets = [8, 0], sizes = [8, 4], strides = [1, 1]} : vector<24x4xf32> to vector<8x4xf32>
    %168 = vector.extract_strided_slice %165 {offsets = [16, 0], sizes = [8, 4], strides = [1, 1]} : vector<24x4xf32> to vector<8x4xf32>
    %169 = arith.maximumf %166, %167 : vector<8x4xf32>
    %170 = arith.maximumf %169, %168 : vector<8x4xf32>
    %171 = tpu.concatenate %170, %170, %170 in 0 : vector<8x4xf32>, vector<8x4xf32>, vector<8x4xf32> -> vector<24x4xf32>
    %172 = arith.subf %165, %171 : vector<24x4xf32>
    %173 = math.exp %172 : vector<24x4xf32>
    %174 = vector.extract_strided_slice %173 {offsets = [0, 0], sizes = [8, 4], strides = [1, 1]} : vector<24x4xf32> to vector<8x4xf32>
    %175 = vector.extract_strided_slice %173 {offsets = [8, 0], sizes = [8, 4], strides = [1, 1]} : vector<24x4xf32> to vector<8x4xf32>
    %176 = arith.addf %174, %175 : vector<8x4xf32>
    %177 = vector.extract_strided_slice %173 {offsets = [16, 0], sizes = [8, 4], strides = [1, 1]} : vector<24x4xf32> to vector<8x4xf32>
    %178 = arith.addf %176, %177 : vector<8x4xf32>
    %179 = tpu.reciprocal %178 {approx = true} : vector<8x4xf32> -> vector<8x4xf32>
    %180 = tpu.concatenate %179, %179, %179 in 0 : vector<8x4xf32>, vector<8x4xf32>, vector<8x4xf32> -> vector<24x4xf32>
    %181 = arith.mulf %173, %180 : vector<24x4xf32>
    %cst_60 = arith.constant dense<0.000000e+00> : vector<24x32xf32>
    %182 = tpu.matmul %181, %8, %cst_60 {dimension_numbers = #tpu.dot_dimension_numbers<[1], [0], [0], [1], [0, 0, 1, 1], [], []>} : vector<24x4xf32>, vector<4x32xf32>, vector<24x32xf32> -> vector<24x32xf32>
    %183 = arith.mulf %182, %161 : vector<24x32xf32>
    %184 = vector.extract_strided_slice %183 {offsets = [0, 0], sizes = [8, 32], strides = [1, 1]} : vector<24x32xf32> to vector<8x32xf32>
    %185 = vector.extract_strided_slice %183 {offsets = [8, 0], sizes = [8, 32], strides = [1, 1]} : vector<24x32xf32> to vector<8x32xf32>
    %186 = arith.addf %184, %185 : vector<8x32xf32>
    %187 = vector.extract_strided_slice %183 {offsets = [16, 0], sizes = [8, 32], strides = [1, 1]} : vector<24x32xf32> to vector<8x32xf32>
    %188 = arith.addf %186, %187 : vector<8x32xf32>
    %cst_61 = arith.constant dense<0.000000e+00> : vector<8x32xf32>
    %189 = tpu.matmul %188, %133, %cst_61 {dimension_numbers = #tpu.dot_dimension_numbers<[1], [0], [0], [1], [0, 0, 1, 1], [], []>} : vector<8x32xf32>, vector<32x32xf32>, vector<8x32xf32> -> vector<8x32xf32>
    %cst_62 = arith.constant 3.000000e+00 : f32
    %190 = vector.broadcast %cst_62 : f32 to vector<1x32xf32>
    %191 = arith.mulf %190, %134 : vector<1x32xf32>
    %192 = vector.broadcast %191 : vector<1x32xf32> to vector<8x32xf32>
    %193 = arith.addf %189, %192 : vector<8x32xf32>
    %cst_63 = arith.constant 0.000000e+00 : f32
    %194 = vector.broadcast %cst_63 : f32 to vector<8x32xf32>
    %195 = arith.maximumf %193, %194 : vector<8x32xf32>
    %196 = math.absf %193 : vector<8x32xf32>
    %cst_64 = arith.constant 0.000000e+00 : f32
    %197 = vector.broadcast %cst_64 : f32 to vector<8x32xf32>
    %198 = arith.subf %197, %196 : vector<8x32xf32>
    %199 = math.exp %198 : vector<8x32xf32>
    %200 = math.log1p %199 : vector<8x32xf32>
    %201 = arith.addf %195, %200 : vector<8x32xf32>
    %cst_65 = arith.constant dense<0.000000e+00> : vector<8x8xf32>
    %202 = tpu.matmul %201, %135, %cst_65 {dimension_numbers = #tpu.dot_dimension_numbers<[1], [0], [0], [1], [0, 0, 1, 1], [], []>} : vector<8x32xf32>, vector<32x8xf32>, vector<8x8xf32> -> vector<8x8xf32>
    %cst_66 = arith.constant 0.000000e+00 : f32
    %203 = vector.broadcast %cst_66 : f32 to vector<8x8xf32>
    %204 = arith.maximumf %202, %203 : vector<8x8xf32>
    %205 = math.absf %202 : vector<8x8xf32>
    %cst_67 = arith.constant 0.000000e+00 : f32
    %206 = vector.broadcast %cst_67 : f32 to vector<8x8xf32>
    %207 = arith.subf %206, %205 : vector<8x8xf32>
    %208 = math.exp %207 : vector<8x8xf32>
    %209 = math.log1p %208 : vector<8x8xf32>
    %210 = arith.addf %204, %209 : vector<8x8xf32>
    %211 = arith.addf %128, %210 : vector<8x8xf32>
    %212 = vector.extract_strided_slice %181 {offsets = [0, 0], sizes = [8, 4], strides = [1, 1]} : vector<24x4xf32> to vector<8x4xf32>
    %cst_68 = arith.constant dense<0.000000e+00> : vector<8xf32>
    %213 = vector.multi_reduction <add>, %212, %cst_68 [1] : vector<8x4xf32> to vector<8xf32>
    %214 = vector.shape_cast %213 : vector<8xf32> to vector<8x1xf32>
    %cst_69 = arith.constant 4.000000e+00 : f32
    %215 = vector.broadcast %cst_69 : f32 to vector<8x1xf32>
    %216 = arith.divf %214, %215 : vector<8x1xf32>
    %217 = vector.extract_strided_slice %181 {offsets = [8, 0], sizes = [8, 4], strides = [1, 1]} : vector<24x4xf32> to vector<8x4xf32>
    %cst_70 = arith.constant dense<0.000000e+00> : vector<8xf32>
    %218 = vector.multi_reduction <add>, %217, %cst_70 [1] : vector<8x4xf32> to vector<8xf32>
    %219 = vector.shape_cast %218 : vector<8xf32> to vector<8x1xf32>
    %cst_71 = arith.constant 4.000000e+00 : f32
    %220 = vector.broadcast %cst_71 : f32 to vector<8x1xf32>
    %221 = arith.divf %219, %220 : vector<8x1xf32>
    %222 = vector.extract_strided_slice %181 {offsets = [16, 0], sizes = [8, 4], strides = [1, 1]} : vector<24x4xf32> to vector<8x4xf32>
    %cst_72 = arith.constant dense<0.000000e+00> : vector<8xf32>
    %223 = vector.multi_reduction <add>, %222, %cst_72 [1] : vector<8x4xf32> to vector<8xf32>
    %224 = vector.shape_cast %223 : vector<8xf32> to vector<8x1xf32>
    %cst_73 = arith.constant 4.000000e+00 : f32
    %225 = vector.broadcast %cst_73 : f32 to vector<8x1xf32>
    %226 = arith.divf %224, %225 : vector<8x1xf32>
    %227 = tpu.concatenate %216, %221, %226 in 1 : vector<8x1xf32>, vector<8x1xf32>, vector<8x1xf32> -> vector<8x3xf32>
    %228 = vector.broadcast %3 : vector<1x8xf32> to vector<8x8xf32>
    %229 = arith.mulf %211, %228 : vector<8x8xf32>
    %cst_74 = arith.constant dense<0.000000e+00> : vector<8xf32>
    %230 = vector.multi_reduction <add>, %229, %cst_74 [1] : vector<8x8xf32> to vector<8xf32>
    %231 = vector.shape_cast %230 : vector<8xf32> to vector<8x1xf32>
    %cst_75 = arith.constant dense<0.000000e+00> : vector<8x1xf32>
    %232 = tpu.matmul %5, %231, %cst_75 {dimension_numbers = #tpu.dot_dimension_numbers<[1], [0], [0], [1], [0, 0, 1, 1], [], []>} : vector<8x8xf32>, vector<8x1xf32>, vector<8x1xf32> -> vector<8x1xf32>
    %233 = vector.extract_strided_slice %40 {offsets = [0, 0], sizes = [8, 1], strides = [1, 1]} : vector<16x1xf32> to vector<8x1xf32>
    %234 = vector.extract_strided_slice %40 {offsets = [8, 0], sizes = [8, 1], strides = [1, 1]} : vector<16x1xf32> to vector<8x1xf32>
    %235 = tpu.concatenate %233, %234 in 1 : vector<8x1xf32>, vector<8x1xf32> -> vector<8x2xf32>
    %cst_76 = arith.constant 0.000000e+00 : f32
    %236 = vector.broadcast %cst_76 : f32 to vector<8x122xf32>
    %237 = tpu.concatenate %232, %227, %235, %236 in 1 : vector<8x1xf32>, vector<8x3xf32>, vector<8x2xf32>, vector<8x122xf32> -> vector<8x128xf32>
    %c0_77 = arith.constant 0 : index
    %c0_78 = arith.constant 0 : index
    %238 = vector.load %arg2[%c0_77, %c0_78] : memref<8x128xf32, #tpu.memory_space<vmem>>, vector<8x128xf32>
    tpu.vector_store %arg2[%c0_77, %c0_78], %237 {strides = array<i32>} : memref<8x128xf32, #tpu.memory_space<vmem>>, vector<8x128xf32>,
    return
  }
}

</mosaic_0001>

<bundles_post_ra>
// kernel: sahts_forward.1
= control target key start
LH: loop header
LB: loop body
LE: loop exit
PB: predicated region body
PF: predicated region fallthrough
CT: control target
= control target key end

     0   :  { %7 = vsyncpa [#allocation3], 0  ;;  %s2363_s9 = smov [#allocation2]   ;;  %s2626_s0 = inlined_call_operand.vmem [shape: f32[24,8], index: 0, kind: input, shape index: {}]   ;;  %s2627_s1 = inlined_call_operand.hbm [shape: f32[408,128], index: 1, kind: input, shape index: {}]   ;;  %s2628_s2 = inlined_call_operand.vmem [shape: f32[8,128], index: 2, kind: output, shape index: {}]  }
   0x1   :  { %s15_s10 = sshll.u32 %s2363_s9, 4  ;;  %s16_s10 = int_to_ptr.vmem [resolvable:$true] %s15_s10 }
   0x2   :  { %s2349_s11 = scalar_lea.vmem %s16_s10, 6528  ;;  %p2354_p1 = scmp.lt.s32.totalorder %s16_s10, %s16_s10 }
   0x3   :  { %p2350_p0 = scmp.ne.s32.totalorder %s16_s10, %s2349_s11  ;;  %p2355_p2 = scmp.lt.s32.totalorder %s2349_s11, %s2349_s11 }
   0x5   :  { %p2356_p3 = por %p2355_p2, %p2354_p1 }
   0x7   :  { %p2357_p4 = pnand %p2356_p3, %p2350_p0 }
   0x9   :  { %2360 = shalt.err (!%p2357_p4)
}
   0xa   :  { %s2364_s12 = smov 128   ;;  %s2365_s13 = smov 8  }
   0xb   :  { %21 = dma.hbm_to_vmem [thread:$0]  %s2627_s1, 6528, %s16_s10, [#allocation3], %s2364_s12, %s2364_s12, %s2365_s13  }
   0xc   :  { %2361 = dma.done.wait [#allocation3], 6528  }
   0xd   :  { %2362 = vsyncadd [#allocation3], 4294960768  ;;  %v2366_v0 = vmov 0.0   ;;  %vm2367_vm0 = vmmov 0   ;;  %vm61_vm1 = vcmask 64512   ;;  %vm42_vm2 = vcmask 130048  }
   0xe   :  { %2082 = vmatprep.subr.mxu1 %v2366_v0  ;;  %2084 = vmatprep.mubr.msk.f32.mxu1 %vm2367_vm0, %v2366_v0  ;;  %v204_v1 = vld [vmem:[#allocation2 + $0x68] sm:$0xff]  ;;  %v2397_v2 = vld [vmem:[%s2626_s0] sm:$0xff]  ;;  %v27_v5 = vld [vmem:[%s2626_s0 + $0x10] sm:$0xff]  ;;  %vm311_vm6 = vcmask 261120   ;;  %s2369_s21 = smov 96   ;;  %s2370_s22 = smov 64  }
   0xf   :  { %v26_v3 = vld [vmem:[%s2626_s0 + $0x8] sm:$0xff]  ;;  %2083 = vmatpush3.msra.mxu1 %v204_v1  ;;  %v1942_v4 = vld [vmem:[#allocation2] ss:$0 sm:$0xff]  ;;  %v2405_v6 = vld [vmem:[#allocation2 + $0x38] sm:$0xff]  ;;  %vm748_vm10 = vcmask 1043456   ;;  %vm738_vm11 = vcmask 31744  }
  0x10   :  { %2085 = vmatmul.mubr.msk.f32.vlgmr.msra.gmra.mxu1 %vm61_vm1, %v2397_v2  ;;  %v59_v7 = vmul.f32 %v1942_v4, %v26_v3  ;;  %v60_v8 = vmul.f32 %v1942_v4, %v27_v5  ;;  %v46_v9 = vsel %vm42_vm2, %v2405_v6, 0.0  ;;  %v35_v10 = vld [vmem:[#allocation2 + $0x30] sm:$0xff]  ;;  %2087 = vmatprep.subr.mxu1 %v2366_v0  ;;  %v208_v14 = vld [vmem:[#allocation2 + $0x88] sm:$0xff]  ;;  %v207_v15 = vld [vmem:[#allocation2 + $0x80] sm:$0xff]  ;;  %s2371_s23 = smov 1   ;;  %s2372_s24 = smov 4  }
  0x11   :  { %47 = vadd.xlane.f32.xlu1 %v46_v9  ;;  %2095 = vmatprep.mubr.msk.f32.mxu1 %vm2367_vm0, %v2366_v0  ;;  %v43_v12 = vsel %vm42_vm2, %v35_v10, 0.0  ;;  %v206_v16 = vld [vmem:[#allocation2 + $0x78] sm:$0xff]  ;;  %v205_v17 = vld [vmem:[#allocation2 + $0x70] sm:$0xff] }
  0x12   :  { %v62_v11 = vsel %vm61_vm1, %v59_v7, 0.0  ;;  %2079 = vmatprep.mubr.msk.f32.mxu0 %vm42_vm2, %v35_v10  ;;  %v65_v13 = vsel %vm61_vm1, %v60_v8, 0.0  ;;  %2088 = vmatpush3.msra.mxu1 %v208_v14 }
  0x13   :  { %63 = vadd.xlane.f32.xlu0 %v62_v11  ;;  %2089 = vmatprep.subr.mxu1 %v2366_v0 }
  0x14   :  { %2090 = vmatpush3.msra.mxu1 %v207_v15 }
  0x15   :  { %44 = vadd.xlane.f32.xlu1 %v43_v12  ;;  %2091 = vmatprep.subr.mxu1 %v2366_v0 }
  0x16   :  { %2092 = vmatpush3.msra.mxu1 %v206_v16 }
  0x17   :  { %66 = vadd.xlane.f32.xlu0 %v65_v13  ;;  %2093 = vmatprep.subr.mxu1 %v2366_v0 }
  0x18   :  { %2094 = vmatpush3.msra.mxu1 %v205_v17 }
  0x19   :  { %2120 = vmatprep.subr.mxu1 %v2366_v0 }
  0x9a   :  { %v48_v15 = vpop.xlane.xlu1 %47 }
  0x9b   :  { %vm50_vm7 = vcmp.gt.f32.partialorder %v48_v15, 0.5 }
  0x9c   :  { %v64_v18 = vpop.xlane.xlu0 %63  ;;  %v1941_v17 = vsel %vm50_vm7, 1.0, %v2366_v0 }
  0x9d   :  { %v70_v19 = vand.u32 2147483647, %v64_v18  ;;  %v68_v39 = vmax.f32 %v64_v18, 0.0 }
  0x9e   :  { %v45_v16 = vpop.xlane.xlu1 %44 }
  0x9f   :  { %v72_v20 = vsub.f32 0.0, %v70_v19  ;;  %vm49_vm8 = vcmp.gt.f32.partialorder %v45_v16, 0.5 }
  0xa0   :  { %v67_v21 = vpop.xlane.xlu0 %66 }
  0xa1   :  { %v74_v22 = vmul.f32 1.442695, %v72_v20  ;;  %v71_v23 = vand.u32 2147483647, %v67_v21  ;;  %v69_v43 = vmax.f32 %v67_v21, 0.0  ;;  %v1940_v20 = vsel %vm49_vm8, 1.0, %v2366_v0 }
  0xa3   :  { %2277 = vpow2.f32 %v74_v22  ;;  %v73_v24 = vsub.f32 0.0, %v71_v23  ;;  %v2429_v23 = vld [vmem:[#allocation2 + $0x8] sm:$0xff] }
  0xa5   :  { %v76_v25 = vmul.f32 1.442695, %v73_v24  ;;  %v2368_v24 = vmov 0  }
  0xa6   :  { %2276 = vset.pattern.permute.xlu1 %v2368_v24  ;;  %2275 = vset.pattern.permute.xlu0 %v2368_v24 }
  0xa7   :  { %2279 = vpow2.f32 %v76_v25 }
  0xb0   :  { %v2278_v26 = vpop.eup %2277 }
  0xb1   :  { %v78_v27 = vadd.f32 1.0, %v2278_v26  ;;  %v81_v30 = vmul.f32 -0.5, %v2278_v26  ;;  %v84_v33 = vand.u32 2147483647, %v2278_v26 }
  0xb3   :  { %2281 = vlog2.f32 %v78_v27  ;;  %v82_v31 = vadd.f32 1.0, %v81_v30  ;;  %vm85_vm3 = vcmp.lt.f32.partialorder %v84_v33, 0.0004427343 }
  0xb4   :  { %v2280_v28 = vpop.eup %2279 }
  0xb5   :  { %v87_v29 = vadd.f32 1.0, %v2280_v28  ;;  %v90_v32 = vmul.f32 -0.5, %v2280_v28  ;;  %v83_v34 = vmul.f32 %v2278_v26, %v82_v31  ;;  %v93_v37 = vand.u32 2147483647, %v2280_v28 }
  0xb7   :  { %2283 = vlog2.f32 %v87_v29  ;;  %v91_v35 = vadd.f32 1.0, %v90_v32  ;;  %vm94_vm4 = vcmp.lt.f32.partialorder %v93_v37, 0.0004427343 }
  0xb9   :  { %v92_v41 = vmul.f32 %v2280_v28, %v91_v35 }
  0xc0   :  { %v2282_v36 = vpop.eup %2281 }
  0xc1   :  { %v80_v38 = vmul.f32 0.6931472, %v2282_v36 }
  0xc3   :  { %v86_v40 = vsel %vm85_vm3, %v83_v34, %v80_v38  ;;  %vm1832_vm3 = vcmask 7168  }
  0xc4   :  { %v2284_v42 = vpop.eup %2283  ;;  %v96_v45 = vadd.f32 %v86_v40, %v68_v39  ;;  %v116_v40 = vsub.f32 1.0, %v1941_v17 }
  0xc5   :  { %v89_v44 = vmul.f32 0.6931472, %v2284_v42 }
  0xc7   :  { %v95_v46 = vsel %vm94_vm4, %v92_v41, %v89_v44  ;;  %v2433_v41 = vld [vmem:[#allocation2 + $0x10] sm:$0xff]  ;;  %vm1834_vm4 = vcmask 15360  }
  0xc8   :  { %v97_v47 = vadd.f32 %v95_v46, %v69_v43  ;;  %v2435_v43 = vld [vmem:[#allocation2 + $0x18] sm:$0xff] }
  0xca   :  { %v98_v48 = vmax.f32 %v96_v45, %v97_v47 }
  0xcc   :  { %v99_v49 = vrot.slane %v98_v48, 4 }
  0xce   :  { %v100_v50 = vmax.f32 %v98_v48, %v99_v49  ;;  %v2441_v48 = vld [vmem:[#allocation2 + $0x20] sm:$0xff] }
  0xd0   :  { %v292_v51 = vpop.f32.mrf.mxu1  ;;  %v101_v52 = vrot.slane %v100_v50, 2 }
  0xd1   :  { %v297_v53 = vand.u32 2147483647, %v292_v51  ;;  %v296_v7 = vmax.f32 %v292_v51, 0.0 }
  0xd2   :  { %v2086_v54 = vpop.f32.mrf.mxu1  ;;  %v102_v55 = vmax.f32 %v100_v50, %v101_v52  ;;  %v212_v52 = vld [vmem:[#allocation2 + $0xa8] sm:$0xff] }
  0xd3   :  { %v298_v56 = vsub.f32 0.0, %v297_v53 }
  0xd4   :  { %v103_v57 = vrot.slane %v102_v55, 1 }
  0xd5   :  { %v299_v58 = vmul.f32 1.442695, %v298_v56  ;;  %v211_v56 = vld [vmem:[#allocation2 + $0xa0] sm:$0xff] }
  0xd6   :  { %v104_v59 = vmax.f32 %v102_v55, %v103_v57  ;;  %v210_v57 = vld [vmem:[#allocation2 + $0x98] sm:$0xff] }
  0xd7   :  { %2285 = vpow2.f32 %v299_v58  ;;  %v209_v58 = vld [vmem:[#allocation2 + $0x90] sm:$0xff] }
  0xd8   :  { %2263 = vpush %v104_v59 }
  0xe4   :  { %v2286_v60 = vpop.eup %2285 }
  0xe5   :  { %v301_v61 = vadd.f32 1.0, %v2286_v60  ;;  %v304_v62 = vmul.f32 -0.5, %v2286_v60  ;;  %v307_v1 = vand.u32 2147483647, %v2286_v60 }
  0xe7   :  { %2287 = vlog2.f32 %v301_v61  ;;  %v305_v63 = vadd.f32 1.0, %v304_v62  ;;  %vm308_vm5 = vcmp.lt.f32.partialorder %v307_v1, 0.0004427343 }
  0xe9   :  { %v306_v5 = vmul.f32 %v2286_v60, %v305_v63 }
  0xf4   :  { %v2288_v3 = vpop.eup %2287 }
  0xf5   :  { %v303_v4 = vmul.f32 0.6931472, %v2288_v3 }
  0xf7   :  { %v309_v8 = vsel %vm308_vm5, %v306_v5, %v303_v4  ;;  %v2464_v5 = vld [vmem:[#allocation2 + $0x58] sm:$0xff]  ;;  %vm1932_vm5 = vcmask 48128  }
  0xf8   :  { %v310_v9 = vadd.f32 %v309_v8, %v296_v7  ;;  %v2466_v7 = vld [vmem:[#allocation2 + $0x50] sm:$0xff]  ;;  %v2470_v8 = vld [vmem:[#allocation2 + $0x48] sm:$0xff] }
  0xfa   :  { %2096 = vmatmul.mubr.msk.f32.vlgmr.msra.gmra.mxu1 %vm311_vm6, %v310_v9  ;;  %v2476_v9 = vld [vmem:[#allocation2 + $0x40] sm:$0xff] }
  0xfb   :  { %2128 = vmatprep.mubr.msk.f32.mxu1 %vm2367_vm0, %v2366_v0  ;;  %2121 = vmatpush3.msra.mxu1 %v2464_v5 }
  0xfc   :  { %2122 = vmatprep.subr.mxu1 %v2366_v0 }
  0xfd   :  { %2123 = vmatpush3.msra.mxu1 %v2466_v7 }
  0xfe   :  { %2124 = vmatprep.subr.mxu1 %v2366_v0 }
  0xff   :  { %2125 = vmatpush3.msra.mxu1 %v2470_v8 }
 0x100   :  { %2126 = vmatprep.subr.mxu1 %v2366_v0 }
 0x101   :  { %2127 = vmatpush3.msra.mxu1 %v2476_v9 }
 0x102   :  { %2148 = vmatprep.subr.mxu1 %v2366_v0 }
 0x109   :  { %s2264_s0 = spop %2263 }
 0x10a   :  { %v106_v10 = vstv %s2264_s0 }
 0x10b   :  { %v107_v11 = vsub.f32 %v96_v45, %v106_v10  ;;  %v108_v12 = vsub.f32 %v97_v47, %v106_v10  ;;  %v115_v45 = vsub.f32 1.0, %v1940_v20 }
 0x10d   :  { %v109_v13 = vmul.f32 1.442695, %v107_v11  ;;  %v111_v14 = vmul.f32 1.442695, %v108_v12  ;;  %v1951_v11 = vld [vmem:[#allocation2 + $0xb0] ss:$0 sm:$0xff] }
 0x10f   :  { %2289 = vpow2.f32 %v109_v13 }
 0x110   :  { %2291 = vpow2.f32 %v111_v14 }
 0x11c   :  { %v2290_v18 = vpop.eup %2289 }
 0x11d   :  { %v2292_v19 = vpop.eup %2291  ;;  %v113_v22 = vmul.f32 %v2290_v18, %v1940_v20 }
 0x11e   :  { %v114_v21 = vmul.f32 %v2292_v19, %v1941_v17 }
 0x120   :  { %2075 = vmatprep.subr.mxu0 %v114_v21 }
 0x121   :  { %2076 = vmatpush3.msra.mxu0 %v114_v21 }
 0x122   :  { %2077 = vmatprep.subr.mxu0 %v113_v22 }
 0x123   :  { %2078 = vmatpush3.msra.mxu0 %v113_v22 }
 0x124   :  { %2080 = vmatmul.mubr.msk.f32.vlgmr.msra.gmra.mxu0 %vm42_vm2, %v2405_v6 }
 0x125   :  { %2100 = vmatprep.mubr.msk.f32.mxu0 %vm61_vm1, %v2429_v23 }
 0x1ba   :  { %v381_v25 = vpop.f32.mrf.mxu1 }
 0x1bb   :  { %v386_v26 = vand.u32 2147483647, %v381_v25  ;;  %v385_v37 = vmax.f32 %v381_v25, 0.0 }
 0x1bc   :  { %v2097_v27 = vpop.f32.mrf.mxu1 }
 0x1bd   :  { %v387_v28 = vsub.f32 0.0, %v386_v26  ;;  %v2495_v26 = vld [vmem:[#allocation2 + $0x60] sm:$0xf] }
 0x1bf   :  { %v388_v29 = vmul.f32 1.442695, %v387_v28 }
 0x1c1   :  { %2293 = vpow2.f32 %v388_v29 }
 0x1ce   :  { %v2294_v30 = vpop.eup %2293 }
 0x1cf   :  { %v390_v31 = vadd.f32 1.0, %v2294_v30  ;;  %v393_v32 = vmul.f32 -0.5, %v2294_v30  ;;  %v396_v6 = vand.u32 2147483647, %v2294_v30 }
 0x1d1   :  { %2295 = vlog2.f32 %v390_v31  ;;  %v394_v33 = vadd.f32 1.0, %v393_v32  ;;  %vm397_vm9 = vcmp.lt.f32.partialorder %v396_v6, 0.0004427343 }
 0x1d3   :  { %v395_v36 = vmul.f32 %v2294_v30, %v394_v33 }
 0x1de   :  { %v2296_v34 = vpop.eup %2295 }
 0x1df   :  { %v392_v35 = vmul.f32 0.6931472, %v2296_v34 }
 0x1e1   :  { %v398_v38 = vsel %vm397_vm9, %v395_v36, %v392_v35 }
 0x1e2   :  { %v399_v39 = vadd.f32 %v398_v38, %v385_v37 }
 0x1e4   :  { %v2081_v42 = vpop.f32.mrf.mxu0  ;;  %2098 = vmatprep.subr.mxu0 %v399_v39 }
 0x1e5   :  { %v195_v44 = vadd.f32 %v2081_v42, %v116_v40  ;;  %2099 = vmatpush3.msra.mxu0 %v399_v39 }
 0x1e6   :  { %v189_v46 = vpop.f32.mrf.mxu0  ;;  %2101 = vmatmul.mubr.msk.f32.vlgmr.msra.gmra.mxu0 %vm61_vm1, %v2433_v41  ;;  %2106 = vmatprep.subr.mxu0 %v212_v52 }
 0x1e7   :  { %2297 = vrcp.f32 %v195_v44  ;;  %v190_v47 = vadd.f32 %v189_v46, %v115_v45  ;;  %2103 = vmatprep.mubr.msk.f32.mxu0 %vm61_vm1, %v2435_v43  ;;  %2107 = vmatpush3.msra.mxu0 %v212_v52 }
 0x1e8   :  { %2108 = vmatprep.subr.mxu0 %v211_v56 }
 0x1e9   :  { %2299 = vrcp.f32 %v190_v47  ;;  %2109 = vmatpush3.msra.mxu0 %v211_v56  ;;  %v215_v56 = vld [vmem:[#allocation2 + $0xc0] sm:$0xff] }
 0x1ea   :  { %2104 = vmatmul.mubr.msk.f32.gmra.mxu0 %vm61_vm1, %v2441_v48  ;;  %2110 = vmatprep.subr.mxu0 %v210_v57 }
 0x1eb   :  { %2111 = vmatpush3.msra.mxu0 %v210_v57  ;;  %v214_v57 = vld [vmem:[#allocation2 + $0xb8] sm:$0xff] }
 0x1ec   :  { %2112 = vmatprep.subr.mxu0 %v209_v58 }
 0x1ed   :  { %2113 = vmatpush3.msra.mxu0 %v209_v58 }
 0x1ee   :  { %2137 = vmatprep.subr.mxu0 %v2366_v0 }
 0x1f4   :  { %v2298_v49 = vpop.eup %2297 }
 0x1f5   :  { %v2445_v50 = vmul.f32 %v2298_v49, %v114_v21 }
 0x1f6   :  { %v2300_v51 = vpop.eup %2299 }
 0x1f7   :  { %v203_v53 = vadd.f32 %v2445_v50, %v116_v40  ;;  %v2448_v54 = vmul.f32 %v2300_v51, %v113_v22 }
 0x1f9   :  { %504 = vperm.xlu1 %2276, %v203_v53   ;;  %v202_v55 = vadd.f32 %v2448_v54, %v115_v45  ;;  %v217_v53 = vld [vmem:[#allocation2 + $0xd0] sm:$0xff] }
 0x1fb   :  { %499 = vperm.xlu0 %2275, %v202_v55   ;;  %v216_v55 = vld [vmem:[#allocation2 + $0xc8] sm:$0xff] }
 0x274   :  { %v2454_v62 = vpop.permute.xlu1 %504 }
 0x276   :  { %v2452_v60 = vpop.permute.xlu0 %499 }
 0x2a6   :  { %v2102_v59 = vpop.f32.mrf.mxu0 }
 0x2a7   :  { %v513_v1 = vmul.f32 %v2102_v59, %v2454_v62 }
 0x2a8   :  { %v478_v61 = vpop.f32.mrf.mxu0 }
 0x2a9   :  { %v512_v63 = vmul.f32 %v2452_v60, %v478_v61 }
 0x2aa   :  { %v2105_v3 = vpop.f32.mrf.mxu0 }
 0x2ab   :  { %2114 = vmatprep.mubr.msk.f32.mxu0 %vm311_vm6, %v512_v63 }
 0x2ac   :  { %2115 = vmatmul.mubr.msk.f32.vlgmr.msra.gmra.mxu0 %vm311_vm6, %v513_v1  ;;  %v488_v4 = vpop.f32.mrf.mxu0 }
 0x2ad   :  { %2117 = vmatprep.mubr.msk.f32.mxu0 %vm311_vm6, %v488_v4  ;;  %2138 = vmatpush3.msk.msra.mxu0 %vm748_vm10, %v2495_v26 }
 0x2ae   :  { %2159 = vmatprep.subr.mxu0 %v2366_v0 }
 0x2b0   :  { %2118 = vmatmul.mubr.msk.f32.gmra.mxu0 %vm311_vm6, %v2105_v3 }
 0x2b1   :  { %2139 = vmatprep.mubr.msk.f32.mxu0 %vm2367_vm0, %v2366_v0 }
 0x36c   :  { %v2116_v10 = vpop.f32.mrf.mxu0 }
 0x36d   :  { %v604_v16 = vadd.f32 %v2116_v10, %v1951_v11 }
 0x36e   :  { %v598_v12 = vpop.f32.mrf.mxu0 }
 0x36f   :  { %v599_v13 = vadd.f32 %v1951_v11, %v598_v12 }
 0x370   :  { %v2119_v14 = vpop.f32.mrf.mxu0 }
 0x371   :  { %v614_v15 = vadd.f32 %v2119_v14, %v1951_v11  ;;  %620 = vrot.lane.b32.xlu1 %v599_v13, %s2369_s21 }
 0x372   :  { %v608_v17 = vpop.f32.mrf.mxu0 }
 0x373   :  { %v609_v18 = vadd.f32 %v1951_v11, %v608_v17  ;;  %v222_v17 = vld [vmem:[#allocation2 + $0xf8] sm:$0xff] }
 0x375   :  { %622 = vrot.lane.b32.xlu1 %v604_v16, %s2369_s21 }
 0x379   :  { %624 = vrot.lane.b32.xlu1 %v609_v18, %s2369_s21 }
 0x37d   :  { %832 = vrot.lane.b32.xlu1 %v599_v13, %s2370_s22 }
 0x381   :  { %834 = vrot.lane.b32.xlu1 %v604_v16, %s2370_s22 }
 0x385   :  { %836 = vrot.lane.b32.xlu1 %v609_v18, %s2370_s22  ;;  %v221_v18 = vld [vmem:[#allocation2 + $0xf0] sm:$0xff] }
 0x3e3   :  { %v621_v19 = vpop.permute.xlu1 %620 }
 0x3e4   :  { %v629_v20 = vmul.f32 %v621_v19, %v614_v15  ;;  %v220_v19 = vld [vmem:[#allocation2 + $0xe8] sm:$0xff] }
 0x3e6   :  { %2129 = vmatmul.mubr.msk.f32.vlgmr.msra.gmra.mxu1 %vm311_vm6, %v629_v20  ;;  %v219_v20 = vld [vmem:[#allocation2 + $0xe0] sm:$0xff] }
 0x3e7   :  { %v623_v21 = vpop.permute.xlu1 %622  ;;  %2131 = vmatprep.mubr.msk.f32.mxu1 %vm2367_vm0, %v2366_v0  ;;  %2149 = vmatpush3.msra.mxu1 %v217_v53 }
 0x3e8   :  { %v630_v22 = vmul.f32 %v623_v21, %v614_v15  ;;  %2150 = vmatprep.subr.mxu1 %v2366_v0  ;;  %v847_v21 = vlaneseq }
 0x3e9   :  { %2151 = vmatpush3.msra.mxu1 %v216_v55 }
 0x3ea   :  { %2132 = vmatmul.mubr.msk.f32.gmra.mxu1 %vm311_vm6, %v630_v22  ;;  %2152 = vmatprep.subr.mxu1 %v2366_v0  ;;  %v2519_v22 = vshrl.u32 %v847_v21, 7 }
 0x3eb   :  { %v625_v24 = vpop.permute.xlu1 %624  ;;  %2134 = vmatprep.mubr.msk.f32.mxu1 %vm2367_vm0, %v2366_v0  ;;  %2153 = vmatpush3.msra.mxu1 %v215_v56 }
 0x3ec   :  { %v631_v25 = vmul.f32 %v625_v24, %v614_v15  ;;  %2154 = vmatprep.subr.mxu1 %v2366_v0  ;;  %v218_v24 = vld [vmem:[#allocation2 + $0xd8] sm:$0x1] }
 0x3ed   :  { %2155 = vmatpush3.msra.mxu1 %v214_v57 }
 0x3ee   :  { %2135 = vmatmul.mubr.msk.f32.gmra.mxu1 %vm311_vm6, %v631_v25  ;;  %2170 = vmatprep.subr.mxu1 %v2366_v0  ;;  %v846_v25 = vmul.f32 3.0, %v218_v24 }
 0x3ef   :  { %2156 = vmatprep.mubr.msk.f32.mxu1 %vm2367_vm0, %v2366_v0  ;;  %v833_v58 = vpop.permute.xlu1 %832 }
 0x3f3   :  { %v835_v61 = vpop.permute.xlu1 %834 }
 0x3f7   :  { %v837_v11 = vpop.permute.xlu1 %836 }
 0x4a6   :  { %v707_v27 = vpop.f32.mrf.mxu1 }
 0x4a8   :  { %v2130_v28 = vpop.f32.mrf.mxu1 }
 0x4aa   :  { %v712_v29 = vpop.f32.mrf.mxu1 }
 0x4ab   :  { %v721_v31 = vmax.f32 %v707_v27, %v712_v29 }
 0x4ac   :  { %v2133_v30 = vpop.f32.mrf.mxu1 }
 0x4ae   :  { %v717_v32 = vpop.f32.mrf.mxu1 }
 0x4af   :  { %v722_v33 = vmax.f32 %v721_v31, %v717_v32 }
 0x4b0   :  { %v2136_v6 = vpop.f32.mrf.mxu1 }
 0x4b1   :  { %v723_v34 = vsub.f32 %v707_v27, %v722_v33  ;;  %v724_v35 = vsub.f32 %v712_v29, %v722_v33  ;;  %v725_v36 = vsub.f32 %v717_v32, %v722_v33  ;;  %v849_v27 = vsub.s32 0, %v2519_v22 }
 0x4b3   :  { %v726_v37 = vmul.f32 1.442695, %v723_v34  ;;  %v728_v38 = vmul.f32 1.442695, %v724_v35  ;;  %v730_v39 = vmul.f32 1.442695, %v725_v36  ;;  %v850_v28 = vrot.slane %v846_v25, %v849_v27 }
 0x4b5   :  { %2301 = vpow2.f32 %v726_v37 }
 0x4b6   :  { %2303 = vpow2.f32 %v728_v38 }
 0x4b7   :  { %2305 = vpow2.f32 %v730_v39 }
 0x4c2   :  { %v2302_v40 = vpop.eup %2301 }
 0x4c3   :  { %v2304_v42 = vpop.eup %2303 }
 0x4c4   :  { %v732_v44 = vadd.f32 %v2304_v42, %v2302_v40  ;;  %v2306_v45 = vpop.eup %2305 }
 0x4c6   :  { %v733_v46 = vadd.f32 %v2306_v45, %v732_v44 }
 0x4c8   :  { %2307 = vrcp.f32 %v733_v46 }
 0x4d5   :  { %v2308_v47 = vpop.eup %2307 }
 0x4d6   :  { %v735_v49 = vmul.f32 %v2308_v47, %v2302_v40  ;;  %v736_v51 = vmul.f32 %v2308_v47, %v2304_v42  ;;  %v737_v52 = vmul.f32 %v2308_v47, %v2306_v45  ;;  %v1028_v47 = vld [vmem:[#allocation2 + $0x100] sm:$0xff] }
 0x4d8   :  { %2140 = vmatmul.mubr.msk.f32.vlgmr.msra.gmra.mxu0 %vm738_vm11, %v735_v49 }
 0x4d9   :  { %2142 = vmatprep.mubr.msk.f32.mxu0 %vm2367_vm0, %v2366_v0  ;;  %2160 = vmatpush3.msra.mxu0 %v222_v17 }
 0x4da   :  { %2161 = vmatprep.subr.mxu0 %v2366_v0 }
 0x4db   :  { %2162 = vmatpush3.msra.mxu0 %v221_v18 }
 0x4dc   :  { %2143 = vmatmul.mubr.msk.f32.gmra.mxu0 %vm738_vm11, %v736_v51  ;;  %2163 = vmatprep.subr.mxu0 %v2366_v0 }
 0x4dd   :  { %2145 = vmatprep.mubr.msk.f32.mxu0 %vm2367_vm0, %v2366_v0  ;;  %2164 = vmatpush3.msra.mxu0 %v220_v19 }
 0x4de   :  { %2165 = vmatprep.subr.mxu0 %v2366_v0 }
 0x4df   :  { %2166 = vmatpush3.msra.mxu0 %v219_v20 }
 0x4e0   :  { %2146 = vmatmul.mubr.msk.f32.gmra.mxu0 %vm738_vm11, %v737_v52 }
 0x4e1   :  { %2167 = vmatprep.mubr.msk.f32.mxu0 %vm2367_vm0, %v2366_v0 }
 0x598   :  { %v818_v59 = vpop.f32.mrf.mxu0 }
 0x599   :  { %v841_v10 = vmul.f32 %v833_v58, %v818_v59 }
 0x59a   :  { %v2141_v63 = vpop.f32.mrf.mxu0 }
 0x59c   :  { %v823_v1 = vpop.f32.mrf.mxu0 }
 0x59d   :  { %v842_v3 = vmul.f32 %v835_v61, %v823_v1 }
 0x59e   :  { %v2144_v4 = vpop.f32.mrf.mxu0 }
 0x59f   :  { %v844_v13 = vadd.f32 %v842_v3, %v841_v10 }
 0x5a0   :  { %v828_v12 = vpop.f32.mrf.mxu0 }
 0x5a1   :  { %v843_v14 = vmul.f32 %v837_v11, %v828_v12  ;;  %v1032_v12 = vld [vmem:[#allocation2 + $0x120] sm:$0xff] }
 0x5a2   :  { %v2147_v15 = vpop.f32.mrf.mxu0 }
 0x5a3   :  { %v845_v16 = vadd.f32 %v844_v13, %v843_v14  ;;  %v1031_v13 = vld [vmem:[#allocation2 + $0x118] sm:$0xff]  ;;  %v1030_v14 = vld [vmem:[#allocation2 + $0x110] sm:$0xff]  ;;  %v1029_v15 = vld [vmem:[#allocation2 + $0x108] sm:$0xff] }
 0x5a5   :  { %2157 = vmatmul.mubr.msk.f32.vlgmr.msra.gmra.mxu1 %vm311_vm6, %v845_v16 }
 0x5a6   :  { %2172 = vmatprep.mubr.msk.f32.mxu1 %vm2367_vm0, %v2366_v0  ;;  %2171 = vmatpush3.msra.mxu1 %v1028_v47 }
 0x5a7   :  { %2175 = vmatprep.subr.mxu1 %v2366_v0 }
 0x665   :  { %v920_v29 = vpop.f32.mrf.mxu1 }
 0x666   :  { %v921_v30 = vadd.f32 %v920_v29, %v850_v28 }
 0x667   :  { %v2158_v31 = vpop.f32.mrf.mxu1 }
 0x668   :  { %v925_v32 = vand.u32 2147483647, %v921_v30  ;;  %v924_v44 = vmax.f32 %v921_v30, 0.0 }
 0x66a   :  { %v926_v33 = vsub.f32 0.0, %v925_v32 }
 0x66c   :  { %v927_v6 = vmul.f32 1.442695, %v926_v33 }
 0x66e   :  { %2309 = vpow2.f32 %v927_v6 }
 0x67b   :  { %v2310_v34 = vpop.eup %2309 }
 0x67c   :  { %v929_v35 = vadd.f32 1.0, %v2310_v34  ;;  %v932_v36 = vmul.f32 -0.5, %v2310_v34  ;;  %v935_v38 = vand.u32 2147483647, %v2310_v34 }
 0x67e   :  { %2311 = vlog2.f32 %v929_v35  ;;  %v933_v37 = vadd.f32 1.0, %v932_v36  ;;  %vm936_vm12 = vcmp.lt.f32.partialorder %v935_v38, 0.0004427343 }
 0x680   :  { %v934_v42 = vmul.f32 %v2310_v34, %v933_v37 }
 0x68b   :  { %v2312_v39 = vpop.eup %2311 }
 0x68c   :  { %v931_v40 = vmul.f32 0.6931472, %v2312_v39 }
 0x68e   :  { %v937_v45 = vsel %vm936_vm12, %v934_v42, %v931_v40 }
 0x68f   :  { %v938_v46 = vadd.f32 %v937_v45, %v924_v44 }
 0x691   :  { %2168 = vmatmul.mubr.msk.f32.vlgmr.msra.gmra.mxu0 %vm311_vm6, %v938_v46 }
 0x692   :  { %2188 = vmatprep.mubr.msk.f32.mxu0 %vm61_vm1, %v2429_v23 }
 0x751   :  { %v1008_v49 = vpop.f32.mrf.mxu0 }
 0x752   :  { %v1013_v51 = vand.u32 2147483647, %v1008_v49  ;;  %v1012_v23 = vmax.f32 %v1008_v49, 0.0  ;;  %v1036_v49 = vld [vmem:[#allocation2 + $0x140] sm:$0xff] }
 0x753   :  { %v2169_v52 = vpop.f32.mrf.mxu0 }
 0x754   :  { %v1014_v53 = vsub.f32 0.0, %v1013_v51  ;;  %v1035_v51 = vld [vmem:[#allocation2 + $0x138] sm:$0xff]  ;;  %v1034_v52 = vld [vmem:[#allocation2 + $0x130] sm:$0xff] }
 0x756   :  { %v1015_v55 = vmul.f32 1.442695, %v1014_v53  ;;  %v1033_v53 = vld [vmem:[#allocation2 + $0x128] sm:$0xff] }
 0x758   :  { %2313 = vpow2.f32 %v1015_v55 }
 0x765   :  { %v2314_v56 = vpop.eup %2313 }
 0x766   :  { %v1017_v57 = vadd.f32 1.0, %v2314_v56  ;;  %v1020_v58 = vmul.f32 -0.5, %v2314_v56  ;;  %v1023_v61 = vand.u32 2147483647, %v2314_v56 }
 0x768   :  { %2315 = vlog2.f32 %v1017_v57  ;;  %v1021_v59 = vadd.f32 1.0, %v1020_v58  ;;  %vm1024_vm13 = vcmp.lt.f32.partialorder %v1023_v61, 0.0004427343 }
 0x76a   :  { %v1022_v3 = vmul.f32 %v2314_v56, %v1021_v59 }
 0x775   :  { %v2316_v63 = vpop.eup %2315 }
 0x776   :  { %v1019_v1 = vmul.f32 0.6931472, %v2316_v63 }
 0x778   :  { %v1025_v4 = vsel %vm1024_vm13, %v1022_v3, %v1019_v1 }
 0x779   :  { %v1026_v10 = vadd.f32 %v1025_v4, %v1012_v23 }
 0x77b   :  { %v2529_v11 = vadd.f32 %v1026_v10, %v2397_v2 }
 0x77d   :  { %2173 = vmatmul.mubr.msk.f32.vlgmr.msra.gmra.mxu1 %vm61_vm1, %v2529_v11 }
 0x77e   :  { %2183 = vmatprep.mubr.msk.f32.mxu1 %vm2367_vm0, %v2366_v0  ;;  %2176 = vmatpush3.msra.mxu1 %v1032_v12 }
 0x77f   :  { %2177 = vmatprep.subr.mxu1 %v2366_v0 }
 0x780   :  { %2178 = vmatpush3.msra.mxu1 %v1031_v13 }
 0x781   :  { %2179 = vmatprep.subr.mxu1 %v2366_v0 }
 0x782   :  { %2180 = vmatpush3.msra.mxu1 %v1030_v14 }
 0x783   :  { %2181 = vmatprep.subr.mxu1 %v2366_v0 }
 0x784   :  { %2182 = vmatpush3.msra.mxu1 %v1029_v15 }
 0x785   :  { %2208 = vmatprep.subr.mxu1 %v2366_v0 }
 0x83d   :  { %v1116_v2 = vpop.f32.mrf.mxu1 }
 0x83e   :  { %v1121_v16 = vand.u32 2147483647, %v1116_v2  ;;  %v1120_v32 = vmax.f32 %v1116_v2, 0.0 }
 0x83f   :  { %v2174_v17 = vpop.f32.mrf.mxu1 }
 0x840   :  { %v1122_v18 = vsub.f32 0.0, %v1121_v16 }
 0x842   :  { %v1123_v19 = vmul.f32 1.442695, %v1122_v18 }
 0x844   :  { %2317 = vpow2.f32 %v1123_v19 }
 0x851   :  { %v2318_v20 = vpop.eup %2317 }
 0x852   :  { %v1125_v21 = vadd.f32 1.0, %v2318_v20  ;;  %v1128_v24 = vmul.f32 -0.5, %v2318_v20  ;;  %v1131_v28 = vand.u32 2147483647, %v2318_v20 }
 0x854   :  { %2319 = vlog2.f32 %v1125_v21  ;;  %v1129_v25 = vadd.f32 1.0, %v1128_v24  ;;  %vm1132_vm14 = vcmp.lt.f32.partialorder %v1131_v28, 0.0004427343 }
 0x856   :  { %v1130_v31 = vmul.f32 %v2318_v20, %v1129_v25 }
 0x861   :  { %v2320_v29 = vpop.eup %2319 }
 0x862   :  { %v1127_v30 = vmul.f32 0.6931472, %v2320_v29 }
 0x864   :  { %v1133_v33 = vsel %vm1132_vm14, %v1130_v31, %v1127_v30 }
 0x865   :  { %v1134_v6 = vadd.f32 %v1133_v33, %v1120_v32 }
 0x867   :  { %2184 = vmatmul.mubr.msk.f32.vlgmr.msra.gmra.mxu1 %vm311_vm6, %v1134_v6 }
 0x868   :  { %2209 = vmatpush3.msra.mxu1 %v2464_v5  ;;  %2216 = vmatprep.mubr.msk.f32.mxu1 %vm2367_vm0, %v2366_v0 }
 0x869   :  { %2210 = vmatprep.subr.mxu1 %v2366_v0 }
 0x86a   :  { %2211 = vmatpush3.msra.mxu1 %v2466_v7 }
 0x86b   :  { %2212 = vmatprep.subr.mxu1 %v2366_v0 }
 0x86c   :  { %2213 = vmatpush3.msra.mxu1 %v2470_v8 }
 0x86d   :  { %2214 = vmatprep.subr.mxu1 %v2366_v0 }
 0x86e   :  { %2215 = vmatpush3.msra.mxu1 %v2476_v9 }
 0x86f   :  { %2236 = vmatprep.subr.mxu1 %v2366_v0 }
 0x927   :  { %v1204_v34 = vpop.f32.mrf.mxu1 }
 0x928   :  { %v1209_v35 = vand.u32 2147483647, %v1204_v34  ;;  %v1208_v46 = vmax.f32 %v1204_v34, 0.0 }
 0x929   :  { %v2185_v5 = vpop.f32.mrf.mxu1 }
 0x92a   :  { %v1210_v36 = vsub.f32 0.0, %v1209_v35 }
 0x92c   :  { %v1211_v37 = vmul.f32 1.442695, %v1210_v36 }
 0x92e   :  { %2321 = vpow2.f32 %v1211_v37 }
 0x93b   :  { %v2322_v38 = vpop.eup %2321 }
 0x93c   :  { %v1213_v39 = vadd.f32 1.0, %v2322_v38  ;;  %v1216_v7 = vmul.f32 -0.5, %v2322_v38  ;;  %v1219_v42 = vand.u32 2147483647, %v2322_v38 }
 0x93e   :  { %2323 = vlog2.f32 %v1213_v39  ;;  %v1217_v40 = vadd.f32 1.0, %v1216_v7  ;;  %vm1220_vm15 = vcmp.lt.f32.partialorder %v1219_v42, 0.0004427343  ;;  %v1040_v42 = vld [vmem:[#allocation2 + $0x160] sm:$0xff] }
 0x940   :  { %v1218_v45 = vmul.f32 %v2322_v38, %v1217_v40  ;;  %v1041_v40 = vld [vmem:[#allocation2 + $0x168] sm:$0xff] }
 0x94b   :  { %v2324_v44 = vpop.eup %2323 }
 0x94c   :  { %v1215_v8 = vmul.f32 0.6931472, %v2324_v44  ;;  %v1039_v44 = vld [vmem:[#allocation2 + $0x158] sm:$0xff] }
 0x94e   :  { %v1221_v9 = vsel %vm1220_vm15, %v1218_v45, %v1215_v8  ;;  %v1038_v8 = vld [vmem:[#allocation2 + $0x150] sm:$0xff] }
 0x94f   :  { %v1222_v47 = vadd.f32 %v1221_v9, %v1208_v46 }
 0x951   :  { %2186 = vmatprep.subr.mxu0 %v1222_v47 }
 0x952   :  { %2187 = vmatpush3.msra.mxu0 %v1222_v47 }
 0x953   :  { %2189 = vmatmul.mubr.msk.f32.vlgmr.msra.gmra.mxu0 %vm61_vm1, %v2433_v41  ;;  %2194 = vmatprep.subr.mxu0 %v1036_v49 }
 0x954   :  { %2191 = vmatprep.mubr.msk.f32.mxu0 %vm61_vm1, %v2435_v43  ;;  %2195 = vmatpush3.msra.mxu0 %v1036_v49 }
 0x955   :  { %2196 = vmatprep.subr.mxu0 %v1035_v51 }
 0x956   :  { %2197 = vmatpush3.msra.mxu0 %v1035_v51 }
 0x957   :  { %2192 = vmatmul.mubr.msk.f32.gmra.mxu0 %vm61_vm1, %v2441_v48  ;;  %2198 = vmatprep.subr.mxu0 %v1034_v52 }
 0x958   :  { %2199 = vmatpush3.msra.mxu0 %v1034_v52 }
 0x959   :  { %2200 = vmatprep.subr.mxu0 %v1033_v53 }
 0x95a   :  { %2201 = vmatpush3.msra.mxu0 %v1033_v53 }
 0x95b   :  { %2225 = vmatprep.subr.mxu0 %v2366_v0 }
 0xa13   :  { %v2190_v41 = vpop.f32.mrf.mxu0 }
 0xa14   :  { %v1309_v43 = vmul.f32 %v2190_v41, %v2454_v62 }
 0xa15   :  { %v1289_v55 = vpop.f32.mrf.mxu0 }
 0xa16   :  { %v1308_v56 = vmul.f32 %v1289_v55, %v2452_v60  ;;  %v1971_v60 = vld [vmem:[#allocation2 + $0x148] ss:$0 sm:$0xff] }
 0xa17   :  { %v2193_v57 = vpop.f32.mrf.mxu0 }
 0xa18   :  { %2202 = vmatprep.mubr.msk.f32.mxu0 %vm311_vm6, %v1308_v56 }
 0xa19   :  { %2203 = vmatmul.mubr.msk.f32.vlgmr.msra.gmra.mxu0 %vm311_vm6, %v1309_v43  ;;  %v1299_v48 = vpop.f32.mrf.mxu0 }
 0xa1a   :  { %2205 = vmatprep.mubr.msk.f32.mxu0 %vm311_vm6, %v1299_v48  ;;  %2226 = vmatpush3.msk.msra.mxu0 %vm748_vm10, %v2495_v26  ;;  %v1046_v48 = vld [vmem:[#allocation2 + $0x190] sm:$0xff] }
 0xa1b   :  { %2247 = vmatprep.subr.mxu0 %v2366_v0 }
 0xa1d   :  { %2206 = vmatmul.mubr.msk.f32.gmra.mxu0 %vm311_vm6, %v2193_v57 }
 0xa1e   :  { %2227 = vmatprep.mubr.msk.f32.mxu0 %vm2367_vm0, %v2366_v0 }
 0xad9   :  { %v2204_v62 = vpop.f32.mrf.mxu0 }
 0xada   :  { %v1400_v58 = vadd.f32 %v2204_v62, %v1971_v60  ;;  %v1044_v62 = vld [vmem:[#allocation2 + $0x180] sm:$0xff] }
 0xadb   :  { %v1394_v59 = vpop.f32.mrf.mxu0 }
 0xadc   :  { %v1395_v61 = vadd.f32 %v1971_v60, %v1394_v59  ;;  %1418 = vrot.lane.b32.xlu0 %v1400_v58, %s2369_s21  ;;  %v1042_v59 = vld [vmem:[#allocation2 + $0x170] sm:$0x1] }
 0xadd   :  { %v2207_v63 = vpop.f32.mrf.mxu0 }
 0xade   :  { %v1410_v1 = vadd.f32 %v2207_v63, %v1971_v60  ;;  %1416 = vrot.lane.b32.xlu1 %v1395_v61, %s2369_s21 }
 0xadf   :  { %v1404_v3 = vpop.f32.mrf.mxu0 }
 0xae0   :  { %v1405_v26 = vadd.f32 %v1971_v60, %v1404_v3  ;;  %1623 = vrot.lane.b32.xlu0 %v1395_v61, %s2370_s22  ;;  %v1045_v60 = vld [vmem:[#allocation2 + $0x188] sm:$0xff]  ;;  %v1637_v61 = vmul.f32 3.0, %v1042_v59 }
 0xae2   :  { %1420 = vrot.lane.b32.xlu1 %v1405_v26, %s2369_s21  ;;  %v1641_v63 = vrot.slane %v1637_v61, %v849_v27 }
 0xae4   :  { %1627 = vrot.lane.b32.xlu0 %v1405_v26, %s2370_s22 }
 0xae6   :  { %1625 = vrot.lane.b32.xlu1 %v1400_v58, %s2370_s22  ;;  %v1043_v58 = vld [vmem:[#allocation2 + $0x178] sm:$0xff] }
 0xb4e   :  { %v1419_v10 = vpop.permute.xlu0 %1418 }
 0xb4f   :  { %v1426_v12 = vmul.f32 %v1419_v10, %v1410_v1 }
 0xb50   :  { %v1417_v23 = vpop.permute.xlu1 %1416 }
 0xb51   :  { %v1425_v4 = vmul.f32 %v1417_v23, %v1410_v1 }
 0xb52   :  { %v1624_v46 = vpop.permute.xlu0 %1623 }
 0xb53   :  { %2217 = vmatmul.mubr.msk.f32.vlgmr.msra.gmra.mxu1 %vm311_vm6, %v1425_v4 }
 0xb54   :  { %2219 = vmatprep.mubr.msk.f32.mxu1 %vm2367_vm0, %v2366_v0  ;;  %v1421_v13 = vpop.permute.xlu1 %1420  ;;  %2237 = vmatpush3.msra.mxu1 %v1041_v40 }
 0xb55   :  { %v1427_v14 = vmul.f32 %v1421_v13, %v1410_v1  ;;  %2238 = vmatprep.subr.mxu1 %v2366_v0 }
 0xb56   :  { %2239 = vmatpush3.msra.mxu1 %v1040_v42  ;;  %v1628_v53 = vpop.permute.xlu0 %1627 }
 0xb57   :  { %2220 = vmatmul.mubr.msk.f32.gmra.mxu1 %vm311_vm6, %v1426_v12  ;;  %2240 = vmatprep.subr.mxu1 %v2366_v0 }
 0xb58   :  { %2222 = vmatprep.mubr.msk.f32.mxu1 %vm2367_vm0, %v2366_v0  ;;  %2241 = vmatpush3.msra.mxu1 %v1039_v44 }
 0xb59   :  { %2242 = vmatprep.subr.mxu1 %v2366_v0 }
 0xb5a   :  { %2243 = vmatpush3.msra.mxu1 %v1038_v8 }
 0xb5b   :  { %2223 = vmatmul.mubr.msk.f32.gmra.mxu1 %vm311_vm6, %v1427_v14  ;;  %2258 = vmatprep.subr.mxu1 %v2366_v0 }
 0xb5c   :  { %2244 = vmatprep.mubr.msk.f32.mxu1 %vm2367_vm0, %v2366_v0 }
 0xc13   :  { %v1503_v15 = vpop.f32.mrf.mxu1 }
 0xc15   :  { %v2218_v2 = vpop.f32.mrf.mxu1 }
 0xc17   :  { %v1508_v16 = vpop.f32.mrf.mxu1 }
 0xc18   :  { %v1517_v18 = vmax.f32 %v1503_v15, %v1508_v16 }
 0xc19   :  { %v2221_v17 = vpop.f32.mrf.mxu1 }
 0xc1b   :  { %v1513_v19 = vpop.f32.mrf.mxu1 }
 0xc1c   :  { %v1518_v20 = vmax.f32 %v1517_v18, %v1513_v19 }
 0xc1d   :  { %v2224_v21 = vpop.f32.mrf.mxu1 }
 0xc1e   :  { %v1519_v24 = vsub.f32 %v1503_v15, %v1518_v20  ;;  %v1520_v25 = vsub.f32 %v1508_v16, %v1518_v20  ;;  %v1521_v28 = vsub.f32 %v1513_v19, %v1518_v20 }
 0xc20   :  { %v1522_v29 = vmul.f32 1.442695, %v1519_v24  ;;  %v1524_v30 = vmul.f32 1.442695, %v1520_v25  ;;  %v1526_v31 = vmul.f32 1.442695, %v1521_v28 }
 0xc22   :  { %2325 = vpow2.f32 %v1522_v29 }
 0xc23   :  { %2327 = vpow2.f32 %v1524_v30 }
 0xc24   :  { %2329 = vpow2.f32 %v1526_v31 }
 0xc2f   :  { %v2326_v32 = vpop.eup %2325 }
 0xc30   :  { %v2328_v33 = vpop.eup %2327 }
 0xc31   :  { %v1528_v6 = vadd.f32 %v2328_v33, %v2326_v32  ;;  %v2330_v34 = vpop.eup %2329 }
 0xc33   :  { %v1529_v35 = vadd.f32 %v2330_v34, %v1528_v6 }
 0xc35   :  { %2331 = vrcp.f32 %v1529_v35 }
 0xc42   :  { %v2332_v5 = vpop.eup %2331 }
 0xc43   :  { %v1531_v36 = vmul.f32 %v2332_v5, %v2326_v32  ;;  %v1532_v38 = vmul.f32 %v2332_v5, %v2328_v33  ;;  %v2591_v7 = vmul.f32 %v2332_v5, %v2330_v34 }
 0xc45   :  { %2228 = vmatmul.mubr.msk.f32.vlgmr.msra.gmra.mxu0 %vm738_vm11, %v1531_v36  ;;  %v1819_v37 = vsel %vm738_vm11, %v1531_v36, 0.0  ;;  %v1824_v39 = vsel %vm738_vm11, %v1532_v38, 0.0  ;;  %v1828_v42 = vsel %vm738_vm11, %v2591_v7, 0.0 }
 0xc46   :  { %1820 = vadd.xlane.f32.xlu0 %v1819_v37  ;;  %2230 = vmatprep.mubr.msk.f32.mxu0 %vm2367_vm0, %v2366_v0  ;;  %v1985_v37 = vld [vmem:[#allocation2 + $0x1] ss:$0 sm:$0xff] }
 0xc47   :  { %2248 = vmatpush3.msra.mxu0 %v1046_v48 }
 0xc48   :  { %2249 = vmatprep.subr.mxu0 %v2366_v0 }
 0xc49   :  { %2231 = vmatmul.mubr.msk.f32.gmra.mxu0 %vm738_vm11, %v1532_v38 }
 0xc4a   :  { %1825 = vadd.xlane.f32.xlu0 %v1824_v39  ;;  %2233 = vmatprep.mubr.msk.f32.mxu0 %vm2367_vm0, %v2366_v0 }
 0xc4b   :  { %2250 = vmatpush3.msra.mxu0 %v1045_v60 }
 0xc4c   :  { %2251 = vmatprep.subr.mxu0 %v2366_v0 }
 0xc4d   :  { %2234 = vmatmul.mubr.msk.f32.gmra.mxu0 %vm738_vm11, %v2591_v7 }
 0xc4e   :  { %2255 = vmatprep.mubr.msk.f32.mxu0 %vm2367_vm0, %v2366_v0  ;;  %2252 = vmatpush3.msra.mxu0 %v1044_v62 }
 0xc4f   :  { %2253 = vmatprep.subr.mxu0 %v2366_v0 }
 0xc50   :  { %2254 = vmatpush3.msra.mxu0 %v1043_v58 }
 0xc60   :  { %1918 = vrot.lane.b32.xlu0 %v2445_v50, %s2371_s23  ;;  %v1626_v50 = vpop.permute.xlu1 %1625 }
 0xccf   :  { %v1821_v44 = vpop.xlane.xlu0 %1820 }
 0xcd3   :  { %v1826_v8 = vpop.xlane.xlu0 %1825 }
 0xd05   :  { %v1609_v45 = vpop.f32.mrf.mxu0 }
 0xd06   :  { %v1632_v52 = vmul.f32 %v1624_v46, %v1609_v45  ;;  %v34_v45 = vld [vmem:[#allocation2 + $0x28] sm:$0xff] }
 0xd07   :  { %v2229_v9 = vpop.f32.mrf.mxu0 }
 0xd08   :  { %v1827_v9 = vmul.f32 0.25, %v1826_v8 }
 0xd09   :  { %v1614_v47 = vpop.f32.mrf.mxu0 }
 0xd0a   :  { %v1633_v49 = vmul.f32 %v1626_v50, %v1614_v47  ;;  %v1823_v50 = vmul.f32 0.25, %v1821_v44 }
 0xd0b   :  { %v2232_v51 = vpop.f32.mrf.mxu0 }
 0xd0c   :  { %v1635_v55 = vadd.f32 %v1633_v49, %v1632_v52  ;;  %v1833_v49 = vsel %vm1832_vm3, %v1823_v50, %v1827_v9  ;;  %v1919_v52 = vpop.permute.xlu0 %1918 }
 0xd0d   :  { %v1619_v41 = vpop.f32.mrf.mxu0  ;;  %v1921_v7 = vsel %vm1832_vm3, %v2448_v54, %v1919_v52 }
 0xd0e   :  { %v1634_v56 = vmul.f32 %v1628_v53, %v1619_v41 }
 0xd0f   :  { %v2235_v43 = vpop.f32.mrf.mxu0 }
 0xd10   :  { %v1636_v57 = vadd.f32 %v1635_v55, %v1634_v56 }
 0xd12   :  { %2245 = vmatmul.mubr.msk.f32.vlgmr.msra.gmra.mxu1 %vm311_vm6, %v1636_v57 }
 0xd13   :  { %2260 = vmatprep.mubr.msk.f32.mxu1 %vm2367_vm0, %v2366_v0 }
 0xdd2   :  { %v1711_v1 = vpop.f32.mrf.mxu1 }
 0xdd3   :  { %v1712_v3 = vadd.f32 %v1711_v1, %v1641_v63 }
 0xdd4   :  { %v2246_v26 = vpop.f32.mrf.mxu1 }
 0xdd5   :  { %v1716_v23 = vand.u32 2147483647, %v1712_v3  ;;  %v1715_v18 = vmax.f32 %v1712_v3, 0.0 }
 0xdd7   :  { %v1717_v4 = vsub.f32 0.0, %v1716_v23 }
 0xdd9   :  { %v1718_v10 = vmul.f32 1.442695, %v1717_v4 }
 0xddb   :  { %2333 = vpow2.f32 %v1718_v10 }
 0xde8   :  { %v2334_v12 = vpop.eup %2333 }
 0xde9   :  { %v1720_v13 = vadd.f32 1.0, %v2334_v12  ;;  %v1723_v14 = vmul.f32 -0.5, %v2334_v12  ;;  %v1726_v2 = vand.u32 2147483647, %v2334_v12 }
 0xdeb   :  { %2335 = vlog2.f32 %v1720_v13  ;;  %v1724_v15 = vadd.f32 1.0, %v1723_v14  ;;  %vm1727_vm0 = vcmp.lt.f32.partialorder %v1726_v2, 0.0004427343 }
 0xded   :  { %v1725_v17 = vmul.f32 %v2334_v12, %v1724_v15 }
 0xdf8   :  { %v2336_v0 = vpop.eup %2335 }
 0xdf9   :  { %v1722_v16 = vmul.f32 0.6931472, %v2336_v0 }
 0xdfb   :  { %v1728_v22 = vsel %vm1727_vm0, %v1725_v17, %v1722_v16 }
 0xdfc   :  { %v1729_v27 = vadd.f32 %v1728_v22, %v1715_v18 }
 0xdfe   :  { %2256 = vmatmul.mubr.msk.f32.vlgmr.msra.gmra.mxu0 %vm311_vm6, %v1729_v27 }
 0xebe   :  { %v1799_v19 = vpop.f32.mrf.mxu0 }
 0xebf   :  { %v1804_v20 = vand.u32 2147483647, %v1799_v19  ;;  %v1803_v35 = vmax.f32 %v1799_v19, 0.0 }
 0xec0   :  { %v2257_v21 = vpop.f32.mrf.mxu0 }
 0xec1   :  { %v1805_v24 = vsub.f32 0.0, %v1804_v20 }
 0xec3   :  { %v1806_v25 = vmul.f32 1.442695, %v1805_v24 }
 0xec5   :  { %2337 = vpow2.f32 %v1806_v25 }
 0xed2   :  { %v2338_v28 = vpop.eup %2337 }
 0xed3   :  { %v1808_v29 = vadd.f32 1.0, %v2338_v28  ;;  %v1811_v30 = vmul.f32 -0.5, %v2338_v28  ;;  %v1814_v32 = vand.u32 2147483647, %v2338_v28 }
 0xed5   :  { %2339 = vlog2.f32 %v1808_v29  ;;  %v1812_v31 = vadd.f32 1.0, %v1811_v30  ;;  %vm1815_vm2 = vcmp.lt.f32.partialorder %v1814_v32, 0.0004427343 }
 0xed7   :  { %v1813_v34 = vmul.f32 %v2338_v28, %v1812_v31 }
 0xee2   :  { %v2340_v33 = vpop.eup %2339 }
 0xee3   :  { %v1810_v6 = vmul.f32 0.6931472, %v2340_v33 }
 0xee5   :  { %v1816_v5 = vsel %vm1815_vm2, %v1813_v34, %v1810_v6 }
 0xee6   :  { %v1817_v36 = vadd.f32 %v1816_v5, %v1803_v35 }
 0xee8   :  { %v1818_v38 = vadd.f32 %v1817_v36, %v2529_v11 }
 0xeea   :  { %v1840_v39 = vmul.f32 %v1985_v37, %v1818_v38 }
 0xeec   :  { %v1841_v40 = vsel %vm61_vm1, %v1840_v39, 0.0 }
 0xeed   :  { %1842 = vadd.xlane.f32.xlu1 %v1841_v40 }
 0xef1   :  { %1829 = vadd.xlane.f32.xlu1 %v1828_v42 }
 0xf76   :  { %v1843_v46 = vpop.xlane.xlu1 %1842 }
 0xf77   :  { %2259 = vmatpush3.msra.mxu1 %v1843_v46 }
 0xf78   :  { %2261 = vmatmul.mubr.msk.f32.vlgmr.msra.gmra.mxu1 %vm61_vm1, %v34_v45 }
 0xf7a   :  { %v1830_v47 = vpop.xlane.xlu1 %1829 }
 0xf7b   :  { %v1831_v11 = vmul.f32 0.25, %v1830_v47 }
 0xf7d   :  { %v1835_v51 = vsel %vm1834_vm4, %v1833_v49, %v1831_v11 }
 0xf7e   :  { %1923 = vrot.lane.b32.xlu1 %v1835_v51, %s2371_s23 }
 0xf82   :  { %1927 = vrot.lane.b32.xlu1 %v1921_v7, %s2372_s24 }
 0xff0   :  { %v1924_v53 = vpop.permute.xlu1 %1923 }
 0xff4   :  { %v1928_v55 = vpop.permute.xlu1 %1927 }
0x1038   :  { %v1913_v41 = vpop.f32.mrf.mxu1 }
0x1039   :  { %v1930_v56 = vsel %vm1832_vm3, %v1913_v41, %v1924_v53 }
0x103a   :  { %v1931_v43 = vsel %vm738_vm11, %v1930_v56, %v1928_v55  ;;  %v2262_v57 = vpop.f32.mrf.mxu1 }
0x103b   :  { %v1933_v48 = vsel %vm1932_vm5, %v1931_v43, 0.0 }
0x103c   :  { %1934 = vst [vmem:[%s2628_s2] sm:$0xff] %v1933_v48 }
0x103d   :  { %1939 = vsyncpa [#allocation3], 1 }

</bundles_post_ra>
